<compile_context>
chip_gen: v7x
topology: tpu7x:2x2x1
jax: 0.10.0
libtpu: 0.0.40
codegen_flags: <defaults>
</compile_context>

<pallas_src>
import functools

import jax
import jax.numpy as jnp
from jax import lax
from jax.experimental import pallas as pl
from jax.experimental.pallas import tpu as pltpu


def _rup(x, m):
    return ((x + m - 1) // m) * m


# ----------------------------------------------------------------------------
# fused residual-block kernel (one batch item per grid step)
# ----------------------------------------------------------------------------
def _resblock_kernel(x_ref, w_ref, gb_ref, m_ref, o_ref, band_ref, *,
                     W, pad_left, eps):
    C = x_ref.shape[1]
    HW = x_ref.shape[2]
    inv_hw = 1.0 / float(HW)

    # boundary masks, applied once per dx-group on the f32 conv partial
    # (W @ (tap * mask) == (W @ tap) * mask since the mask is per-column)
    mask_m1 = m_ref[0:1, :]                       # dx = -1 : kills col 0
    mask_p1 = m_ref[1:2, :]                       # dx = +1 : kills col W-1

    def fill_bands(img_bf16):
        # Zero ONLY the halo columns that are read but not overwritten below —
        # no full-buffer clears (store slot is the scarcest resource).
        stripe = jnp.zeros((3 * C, W + 1), jnp.bfloat16)
        band_ref[:, pl.ds(pad_left - 1, W + 1)] = stripe            # left halo
        band_ref[:, pl.ds(pad_left + HW - W, W + 1)] = stripe       # right halo
        # Row-shifted bands: band b holds the image shifted by dy = b-1 rows, so
        # one contiguous (3C, HW) slice per dx gives a K=3C matmul.
        band_ref[0 * C:1 * C, pl.ds(pad_left + W, HW)] = img_bf16   # dy = -1
        band_ref[1 * C:2 * C, pl.ds(pad_left, HW)] = img_bf16       # dy =  0
        band_ref[2 * C:3 * C, pl.ds(pad_left - W, HW)] = img_bf16   # dy = +1

    def conv3x3(wbase):
        # 3 dx-grouped matmuls with K = 3C, bf16 operands, f32 accumulation.
        acc = jnp.dot(w_ref[wbase + 1], band_ref[:, pl.ds(pad_left, HW)],
                      preferred_element_type=jnp.float32)
        acc = acc + jnp.dot(w_ref[wbase + 0],
                            band_ref[:, pl.ds(pad_left - 1, HW)],
                            preferred_element_type=jnp.float32) * mask_m1
        acc = acc + jnp.dot(w_ref[wbase + 2],
                            band_ref[:, pl.ds(pad_left + 1, HW)],
                            preferred_element_type=jnp.float32) * mask_p1
        return acc                                                   # (C, HW) f32

    def inorm(h, g, b):
        mean = jnp.sum(h, axis=1, keepdims=True) * inv_hw
        cen = h - mean
        var = jnp.sum(cen * cen, axis=1, keepdims=True) * inv_hw
        # gamma folded into the rsqrt -> a single (C,HW) broadcast multiply
        return cen * (g * lax.rsqrt(var + eps)) + b

    # ---- layer 1: conv3x3 -> InstanceNorm -> ReLU ---------------------------
    fill_bands(x_ref[0].astype(jnp.bfloat16))
    h = inorm(conv3x3(0), gb_ref[:, 0:1], gb_ref[:, 1:2])
    h = jnp.maximum(h, 0.0)

    # ---- layer 2: conv3x3 -> InstanceNorm (band scratch reused) -------------
    fill_bands(h.astype(jnp.bfloat16))
    h2 = inorm(conv3x3(3), gb_ref[:, 2:3], gb_ref[:, 3:4])

    # residual add: re-read the VMEM input tile (no long-lived f32 copy of x)
    o_ref[0] = x_ref[0] + h2


# ----------------------------------------------------------------------------
# wrapper
# ----------------------------------------------------------------------------
def residual_block_pallas(x, w1, g1, b1, w2, g2, b2, eps=1e-5):
    """x: (N, C, H, W) f32; w*: (C, C, 3, 3) PyTorch Conv2d layout; g/b: (C,)."""
    N, C, H, W = x.shape
    assert w1.shape == (C, C, 3, 3) and w2.shape == (C, C, 3, 3)
    HW = H * W
    pad_left = _rup(W + 1, 128)                  # aligned left halo >= W+1
    Lp = _rup(pad_left + HW + W, 128)            # padded flat length

    x2 = x.reshape(N, C, HW).astype(jnp.float32)   # free reshape (contiguous)

    def to_dx_groups(w):
        # (Cout, Cin, ky, kx) -> (kx, Cout, ky*Cin): concat over ky matches the
        # band row order (band b <-> dy = b-1).  bf16 for the MXU operands.
        return jnp.transpose(w, (3, 0, 2, 1)).reshape(3, C, 3 * C).astype(jnp.bfloat16)

    w_all = jnp.concatenate([to_dx_groups(w1), to_dx_groups(w2)], axis=0)  # (6,C,3C)
    gb = jnp.stack([g1, b1, g2, b2], axis=1).astype(jnp.float32)           # (C, 4)

    # column-validity masks: col+dx must stay inside [0, W)
    col = jnp.arange(HW, dtype=jnp.int32) % W
    masks = jnp.stack([(col >= 1), (col <= W - 2)]).astype(jnp.float32)    # (2, HW)

    # VMEM budget from actual buffer sizes (re-derived for v7x's 64 MiB cap)
    need = (2 * 2 * C * HW * 4                 # x + out blocks, double-buffered
            + 2 * 6 * C * 3 * C * 2            # dx-grouped weights (bf16)
            + 2 * (C * 4 * 4 + 2 * HW * 4)     # gamma/beta pack + masks
            + 3 * C * Lp * 2)                  # band staging scratch (bf16)
    vmem_limit = min(max(int(1.5 * need) + (8 << 20), 16 << 20), 64 << 20)

    kern = functools.partial(_resblock_kernel, W=W, pad_left=pad_left, eps=eps)
    out = pl.pallas_call(
        kern,
        out_shape=jax.ShapeDtypeStruct((N, C, HW), jnp.float32),
        grid_spec=pltpu.PrefetchScalarGridSpec(
            num_scalar_prefetch=0,
            grid=(N,),
            in_specs=[
                pl.BlockSpec((1, C, HW), lambda n: (n, 0, 0)),      # x (per image)
                pl.BlockSpec((6, C, 3 * C), lambda n: (0, 0, 0)),   # conv1+conv2 taps
                pl.BlockSpec((C, 4), lambda n: (0, 0)),             # g1,b1,g2,b2 pack
                pl.BlockSpec((2, HW), lambda n: (0, 0)),            # dx boundary masks
            ],
            out_specs=pl.BlockSpec((1, C, HW), lambda n: (n, 0, 0)),
            scratch_shapes=[pltpu.VMEM((3 * C, Lp), jnp.bfloat16)], # band staging
        ),
        compiler_params=pltpu.CompilerParams(
            dimension_semantics=("parallel",),     # megacore sharding over batch
            vmem_limit_bytes=vmem_limit,
        ),
    )(x2, w_all, gb, masks)
    return out.reshape(N, C, H, W)


# ----------------------------------------------------------------------------
# pure-JAX references (f32 and bf16-matmul-matched) for sanity checks
# ----------------------------------------------------------------------------
def residual_block_ref(x, w1, g1, b1, w2, g2, b2, eps=1e-5,
                       matmul_dtype=jnp.float32):
    def conv(h, w):
        kwargs = {}
        if matmul_dtype == jnp.float32:
            kwargs["precision"] = lax.Precision.HIGHEST
        return lax.conv_general_dilated(
            h.astype(matmul_dtype), w.astype(matmul_dtype),
            window_strides=(1, 1), padding=((1, 1), (1, 1)),
            dimension_numbers=('NCHW', 'OIHW', 'NCHW'),
            preferred_element_type=jnp.float32, **kwargs)

    def inorm(h, g, b):
        m = jnp.mean(h, axis=(2, 3), keepdims=True)
        v = jnp.mean((h - m) ** 2, axis=(2, 3), keepdims=True)
        return (h - m) * lax.rsqrt(v + eps) * g.reshape(1, -1, 1, 1) \
            + b.reshape(1, -1, 1, 1)

    h = jax.nn.relu(inorm(conv(x, w1), g1, b1))
    h = inorm(conv(h, w2), g2, b2)
    return x + h


def _rel(a, b):
    a = a.astype(jnp.float32)
    b = b.astype(jnp.float32)
    return float(jnp.linalg.norm(a - b) / jnp.linalg.norm(b))


if __name__ == "__main__":
    key = jax.random.PRNGKey(0)
    kx, kw1, kw2, kg1, kb1, kg2, kb2 = jax.random.split(key, 7)

    # ResidualBlock(64, 64); batch=4 so each v7x TensorCore pipelines >=2 steps
    N, C, H, W = 4, 64, 16, 16
    x = jax.random.normal(kx, (N, C, H, W), jnp.float32)
    wscale = (2.0 / (C * 9)) ** 0.5
    w1 = wscale * jax.random.normal(kw1, (C, C, 3, 3), jnp.float32)
    w2 = wscale * jax.random.normal(kw2, (C, C, 3, 3), jnp.float32)
    g1 = 1.0 + 0.1 * jax.random.normal(kg1, (C,), jnp.float32)
    b1 = 0.1 * jax.random.normal(kb1, (C,), jnp.float32)
    g2 = 1.0 + 0.1 * jax.random.normal(kg2, (C,), jnp.float32)
    b2 = 0.1 * jax.random.normal(kb2, (C,), jnp.float32)

    fwd = jax.jit(residual_block_pallas)
    out = jax.block_until_ready(fwd(x, w1, g1, b1, w2, g2, b2))
    assert out.shape == (N, C, H, W)

    # tight check vs. a bf16-matmul-matched reference (same precision structure)
    ref_bf16 = jax.block_until_ready(
        residual_block_ref(x, w1, g1, b1, w2, g2, b2, matmul_dtype=jnp.bfloat16))
    rel_bf16 = _rel(out, ref_bf16)
    assert rel_bf16 < 5e-3, f"bf16-matched relative error too high: {rel_bf16}"

    # loose check vs. the full-f32 reference (bf16 operand quantization)
    ref_f32 = jax.block_until_ready(
        residual_block_ref(x, w1, g1, b1, w2, g2, b2))
    rel_f32 = _rel(out, ref_f32)
    assert rel_f32 < 5e-2, f"f32 relative error too high: {rel_f32}"

    print("KERNEL_OK")
</pallas_src>

<mosaic_0001>
module attributes {stable_mosaic.version = 11 : i64} {
  func.func @_resblock_kernel(%arg0: i32, %arg1: memref<1x64x256xf32, #tpu.memory_space<vmem>>, %arg2: memref<6x64x192xbf16, #tpu.memory_space<vmem>>, %arg3: memref<64x4xf32, #tpu.memory_space<vmem>>, %arg4: memref<2x256xf32, #tpu.memory_space<vmem>>, %arg5: memref<1x64x256xf32, #tpu.memory_space<vmem>>, %arg6: memref<192x512xbf16, #tpu.memory_space<vmem>>) attributes {dimension_semantics = [#tpu.dimension_semantics<parallel>], iteration_bounds = array<i64: 4>, scalar_prefetch = 0 : i64, scratch_operands = 1 : i64, tpu.core_type = #tpu.core_type<tc>, window_params = [{transform_indices = @transform_0, window_bounds = array<i64: 1, 64, 256>}, {pipeline_mode = #tpu.pipeline_mode<synchronous>, transform_indices = @transform_1, window_bounds = array<i64: 6, 64, 192>}, {pipeline_mode = #tpu.pipeline_mode<synchronous>, transform_indices = @transform_2, window_bounds = array<i64: 64, 4>}, {pipeline_mode = #tpu.pipeline_mode<synchronous>, transform_indices = @transform_3, window_bounds = array<i64: 2, 256>}, {transform_indices = @transform_4, window_bounds = array<i64: 1, 64, 256>}]} {
    %c0 = arith.constant 0 : index
    %c0_0 = arith.constant 0 : index
    %0 = vector.load %arg4[%c0, %c0_0] : memref<2x256xf32, #tpu.memory_space<vmem>>, vector<1x256xf32>
    %c1 = arith.constant 1 : index
    %c0_1 = arith.constant 0 : index
    %1 = vector.load %arg4[%c1, %c0_1] : memref<2x256xf32, #tpu.memory_space<vmem>>, vector<1x256xf32>
    %c0_2 = arith.constant 0 : index
    %c0_3 = arith.constant 0 : index
    %c0_4 = arith.constant 0 : index
    %2 = vector.load %arg1[%c0_2, %c0_3, %c0_4] : memref<1x64x256xf32, #tpu.memory_space<vmem>>, vector<1x64x256xf32>
    %3 = vector.shape_cast %2 : vector<1x64x256xf32> to vector<64x256xf32>
    %4 = arith.truncf %3 : vector<64x256xf32> to vector<64x256xbf16>
    %cst = arith.constant 0.000000e+00 : bf16
    %5 = vector.broadcast %cst : bf16 to vector<192x17xbf16>
    %c0_5 = arith.constant 0 : index
    %c127 = arith.constant 127 : index
    %6 = vector.load %arg6[%c0_5, %c127] : memref<192x512xbf16, #tpu.memory_space<vmem>>, vector<192x17xbf16>
    tpu.vector_store %arg6[%c0_5, %c127], %5 {strides = array<i32>} : memref<192x512xbf16, #tpu.memory_space<vmem>>, vector<192x17xbf16>,
    %c0_6 = arith.constant 0 : index
    %c368 = arith.constant 368 : index
    %7 = vector.load %arg6[%c0_6, %c368] : memref<192x512xbf16, #tpu.memory_space<vmem>>, vector<192x17xbf16>
    tpu.vector_store %arg6[%c0_6, %c368], %5 {strides = array<i32>} : memref<192x512xbf16, #tpu.memory_space<vmem>>, vector<192x17xbf16>,
    %c0_7 = arith.constant 0 : index
    %c144 = arith.constant 144 : index
    %8 = vector.load %arg6[%c0_7, %c144] : memref<192x512xbf16, #tpu.memory_space<vmem>>, vector<64x256xbf16>
    tpu.vector_store %arg6[%c0_7, %c144], %4 {strides = array<i32>} : memref<192x512xbf16, #tpu.memory_space<vmem>>, vector<64x256xbf16>,
    %c64 = arith.constant 64 : index
    %c128 = arith.constant 128 : index
    %9 = vector.load %arg6[%c64, %c128] : memref<192x512xbf16, #tpu.memory_space<vmem>>, vector<64x256xbf16>
    tpu.vector_store %arg6[%c64, %c128], %4 {strides = array<i32>} : memref<192x512xbf16, #tpu.memory_space<vmem>>, vector<64x256xbf16>,
    %c128_8 = arith.constant 128 : index
    %c112 = arith.constant 112 : index
    %10 = vector.load %arg6[%c128_8, %c112] : memref<192x512xbf16, #tpu.memory_space<vmem>>, vector<64x256xbf16>
    tpu.vector_store %arg6[%c128_8, %c112], %4 {strides = array<i32>} : memref<192x512xbf16, #tpu.memory_space<vmem>>, vector<64x256xbf16>,
    %c1_9 = arith.constant 1 : index
    %c0_10 = arith.constant 0 : index
    %c0_11 = arith.constant 0 : index
    %11 = vector.load %arg2[%c1_9, %c0_10, %c0_11] : memref<6x64x192xbf16, #tpu.memory_space<vmem>>, vector<1x64x192xbf16>
    %12 = vector.shape_cast %11 : vector<1x64x192xbf16> to vector<64x192xbf16>
    %c0_12 = arith.constant 0 : index
    %c128_13 = arith.constant 128 : index
    %13 = vector.load %arg6[%c0_12, %c128_13] : memref<192x512xbf16, #tpu.memory_space<vmem>>, vector<192x256xbf16>
    %cst_14 = arith.constant dense<0.000000e+00> : vector<64x256xf32>
    %14 = tpu.matmul %12, %13, %cst_14 {dimension_numbers = #tpu.dot_dimension_numbers<[1], [0], [0], [1], [0, 0, 1, 1], [], []>} : vector<64x192xbf16>, vector<192x256xbf16>, vector<64x256xf32> -> vector<64x256xf32>
    %c0_15 = arith.constant 0 : index
    %c0_16 = arith.constant 0 : index
    %c0_17 = arith.constant 0 : index
    %15 = vector.load %arg2[%c0_15, %c0_16, %c0_17] : memref<6x64x192xbf16, #tpu.memory_space<vmem>>, vector<1x64x192xbf16>
    %16 = vector.shape_cast %15 : vector<1x64x192xbf16> to vector<64x192xbf16>
    %c0_18 = arith.constant 0 : index
    %c127_19 = arith.constant 127 : index
    %17 = vector.load %arg6[%c0_18, %c127_19] : memref<192x512xbf16, #tpu.memory_space<vmem>>, vector<192x256xbf16>
    %cst_20 = arith.constant dense<0.000000e+00> : vector<64x256xf32>
    %18 = tpu.matmul %16, %17, %cst_20 {dimension_numbers = #tpu.dot_dimension_numbers<[1], [0], [0], [1], [0, 0, 1, 1], [], []>} : vector<64x192xbf16>, vector<192x256xbf16>, vector<64x256xf32> -> vector<64x256xf32>
    %19 = vector.broadcast %0 : vector<1x256xf32> to vector<64x256xf32>
    %20 = arith.mulf %18, %19 : vector<64x256xf32>
    %21 = arith.addf %14, %20 : vector<64x256xf32>
    %c2 = arith.constant 2 : index
    %c0_21 = arith.constant 0 : index
    %c0_22 = arith.constant 0 : index
    %22 = vector.load %arg2[%c2, %c0_21, %c0_22] : memref<6x64x192xbf16, #tpu.memory_space<vmem>>, vector<1x64x192xbf16>
    %23 = vector.shape_cast %22 : vector<1x64x192xbf16> to vector<64x192xbf16>
    %c0_23 = arith.constant 0 : index
    %c129 = arith.constant 129 : index
    %24 = vector.load %arg6[%c0_23, %c129] : memref<192x512xbf16, #tpu.memory_space<vmem>>, vector<192x256xbf16>
    %cst_24 = arith.constant dense<0.000000e+00> : vector<64x256xf32>
    %25 = tpu.matmul %23, %24, %cst_24 {dimension_numbers = #tpu.dot_dimension_numbers<[1], [0], [0], [1], [0, 0, 1, 1], [], []>} : vector<64x192xbf16>, vector<192x256xbf16>, vector<64x256xf32> -> vector<64x256xf32>
    %26 = vector.broadcast %1 : vector<1x256xf32> to vector<64x256xf32>
    %27 = arith.mulf %25, %26 : vector<64x256xf32>
    %28 = arith.addf %21, %27 : vector<64x256xf32>
    %c0_25 = arith.constant 0 : index
    %c0_26 = arith.constant 0 : index
    %29 = vector.load %arg3[%c0_25, %c0_26] : memref<64x4xf32, #tpu.memory_space<vmem>>, vector<64x1xf32>
    %c0_27 = arith.constant 0 : index
    %c1_28 = arith.constant 1 : index
    %30 = vector.load %arg3[%c0_27, %c1_28] : memref<64x4xf32, #tpu.memory_space<vmem>>, vector<64x1xf32>
    %cst_29 = arith.constant dense<0.000000e+00> : vector<64xf32>
    %31 = vector.multi_reduction <add>, %28, %cst_29 [1] : vector<64x256xf32> to vector<64xf32>
    %32 = vector.shape_cast %31 : vector<64xf32> to vector<64x1xf32>
    %cst_30 = arith.constant 3.906250e-03 : f32
    %33 = vector.broadcast %cst_30 : f32 to vector<64x1xf32>
    %34 = arith.mulf %32, %33 : vector<64x1xf32>
    %35 = vector.broadcast %34 : vector<64x1xf32> to vector<64x256xf32>
    %36 = arith.subf %28, %35 : vector<64x256xf32>
    %37 = arith.mulf %36, %36 : vector<64x256xf32>
    %cst_31 = arith.constant dense<0.000000e+00> : vector<64xf32>
    %38 = vector.multi_reduction <add>, %37, %cst_31 [1] : vector<64x256xf32> to vector<64xf32>
    %39 = vector.shape_cast %38 : vector<64xf32> to vector<64x1xf32>
    %cst_32 = arith.constant 3.906250e-03 : f32
    %40 = vector.broadcast %cst_32 : f32 to vector<64x1xf32>
    %41 = arith.mulf %39, %40 : vector<64x1xf32>
    %cst_33 = arith.constant 9.99999974E-6 : f32
    %42 = vector.broadcast %cst_33 : f32 to vector<64x1xf32>
    %43 = arith.addf %41, %42 : vector<64x1xf32>
    %44 = math.rsqrt %43 : vector<64x1xf32>
    %45 = arith.mulf %29, %44 : vector<64x1xf32>
    %46 = vector.broadcast %45 : vector<64x1xf32> to vector<64x256xf32>
    %47 = arith.mulf %36, %46 : vector<64x256xf32>
    %48 = vector.broadcast %30 : vector<64x1xf32> to vector<64x256xf32>
    %49 = arith.addf %47, %48 : vector<64x256xf32>
    %cst_34 = arith.constant 0.000000e+00 : f32
    %50 = vector.broadcast %cst_34 : f32 to vector<64x256xf32>
    %51 = arith.maximumf %49, %50 : vector<64x256xf32>
    %52 = arith.truncf %51 : vector<64x256xf32> to vector<64x256xbf16>
    %cst_35 = arith.constant 0.000000e+00 : bf16
    %53 = vector.broadcast %cst_35 : bf16 to vector<192x17xbf16>
    %c0_36 = arith.constant 0 : index
    %c127_37 = arith.constant 127 : index
    %54 = vector.load %arg6[%c0_36, %c127_37] : memref<192x512xbf16, #tpu.memory_space<vmem>>, vector<192x17xbf16>
    tpu.vector_store %arg6[%c0_36, %c127_37], %53 {strides = array<i32>} : memref<192x512xbf16, #tpu.memory_space<vmem>>, vector<192x17xbf16>,
    %c0_38 = arith.constant 0 : index
    %c368_39 = arith.constant 368 : index
    %55 = vector.load %arg6[%c0_38, %c368_39] : memref<192x512xbf16, #tpu.memory_space<vmem>>, vector<192x17xbf16>
    tpu.vector_store %arg6[%c0_38, %c368_39], %53 {strides = array<i32>} : memref<192x512xbf16, #tpu.memory_space<vmem>>, vector<192x17xbf16>,
    %c0_40 = arith.constant 0 : index
    %c144_41 = arith.constant 144 : index
    %56 = vector.load %arg6[%c0_40, %c144_41] : memref<192x512xbf16, #tpu.memory_space<vmem>>, vector<64x256xbf16>
    tpu.vector_store %arg6[%c0_40, %c144_41], %52 {strides = array<i32>} : memref<192x512xbf16, #tpu.memory_space<vmem>>, vector<64x256xbf16>,
    %c64_42 = arith.constant 64 : index
    %c128_43 = arith.constant 128 : index
    %57 = vector.load %arg6[%c64_42, %c128_43] : memref<192x512xbf16, #tpu.memory_space<vmem>>, vector<64x256xbf16>
    tpu.vector_store %arg6[%c64_42, %c128_43], %52 {strides = array<i32>} : memref<192x512xbf16, #tpu.memory_space<vmem>>, vector<64x256xbf16>,
    %c128_44 = arith.constant 128 : index
    %c112_45 = arith.constant 112 : index
    %58 = vector.load %arg6[%c128_44, %c112_45] : memref<192x512xbf16, #tpu.memory_space<vmem>>, vector<64x256xbf16>
    tpu.vector_store %arg6[%c128_44, %c112_45], %52 {strides = array<i32>} : memref<192x512xbf16, #tpu.memory_space<vmem>>, vector<64x256xbf16>,
    %c4 = arith.constant 4 : index
    %c0_46 = arith.constant 0 : index
    %c0_47 = arith.constant 0 : index
    %59 = vector.load %arg2[%c4, %c0_46, %c0_47] : memref<6x64x192xbf16, #tpu.memory_space<vmem>>, vector<1x64x192xbf16>
    %60 = vector.shape_cast %59 : vector<1x64x192xbf16> to vector<64x192xbf16>
    %c0_48 = arith.constant 0 : index
    %c128_49 = arith.constant 128 : index
    %61 = vector.load %arg6[%c0_48, %c128_49] : memref<192x512xbf16, #tpu.memory_space<vmem>>, vector<192x256xbf16>
    %cst_50 = arith.constant dense<0.000000e+00> : vector<64x256xf32>
    %62 = tpu.matmul %60, %61, %cst_50 {dimension_numbers = #tpu.dot_dimension_numbers<[1], [0], [0], [1], [0, 0, 1, 1], [], []>} : vector<64x192xbf16>, vector<192x256xbf16>, vector<64x256xf32> -> vector<64x256xf32>
    %c3 = arith.constant 3 : index
    %c0_51 = arith.constant 0 : index
    %c0_52 = arith.constant 0 : index
    %63 = vector.load %arg2[%c3, %c0_51, %c0_52] : memref<6x64x192xbf16, #tpu.memory_space<vmem>>, vector<1x64x192xbf16>
    %64 = vector.shape_cast %63 : vector<1x64x192xbf16> to vector<64x192xbf16>
    %c0_53 = arith.constant 0 : index
    %c127_54 = arith.constant 127 : index
    %65 = vector.load %arg6[%c0_53, %c127_54] : memref<192x512xbf16, #tpu.memory_space<vmem>>, vector<192x256xbf16>
    %cst_55 = arith.constant dense<0.000000e+00> : vector<64x256xf32>
    %66 = tpu.matmul %64, %65, %cst_55 {dimension_numbers = #tpu.dot_dimension_numbers<[1], [0], [0], [1], [0, 0, 1, 1], [], []>} : vector<64x192xbf16>, vector<192x256xbf16>, vector<64x256xf32> -> vector<64x256xf32>
    %67 = vector.broadcast %0 : vector<1x256xf32> to vector<64x256xf32>
    %68 = arith.mulf %66, %67 : vector<64x256xf32>
    %69 = arith.addf %62, %68 : vector<64x256xf32>
    %c5 = arith.constant 5 : index
    %c0_56 = arith.constant 0 : index
    %c0_57 = arith.constant 0 : index
    %70 = vector.load %arg2[%c5, %c0_56, %c0_57] : memref<6x64x192xbf16, #tpu.memory_space<vmem>>, vector<1x64x192xbf16>
    %71 = vector.shape_cast %70 : vector<1x64x192xbf16> to vector<64x192xbf16>
    %c0_58 = arith.constant 0 : index
    %c129_59 = arith.constant 129 : index
    %72 = vector.load %arg6[%c0_58, %c129_59] : memref<192x512xbf16, #tpu.memory_space<vmem>>, vector<192x256xbf16>
    %cst_60 = arith.constant dense<0.000000e+00> : vector<64x256xf32>
    %73 = tpu.matmul %71, %72, %cst_60 {dimension_numbers = #tpu.dot_dimension_numbers<[1], [0], [0], [1], [0, 0, 1, 1], [], []>} : vector<64x192xbf16>, vector<192x256xbf16>, vector<64x256xf32> -> vector<64x256xf32>
    %74 = vector.broadcast %1 : vector<1x256xf32> to vector<64x256xf32>
    %75 = arith.mulf %73, %74 : vector<64x256xf32>
    %76 = arith.addf %69, %75 : vector<64x256xf32>
    %c0_61 = arith.constant 0 : index
    %c2_62 = arith.constant 2 : index
    %77 = vector.load %arg3[%c0_61, %c2_62] : memref<64x4xf32, #tpu.memory_space<vmem>>, vector<64x1xf32>
    %c0_63 = arith.constant 0 : index
    %c3_64 = arith.constant 3 : index
    %78 = vector.load %arg3[%c0_63, %c3_64] : memref<64x4xf32, #tpu.memory_space<vmem>>, vector<64x1xf32>
    %cst_65 = arith.constant dense<0.000000e+00> : vector<64xf32>
    %79 = vector.multi_reduction <add>, %76, %cst_65 [1] : vector<64x256xf32> to vector<64xf32>
    %80 = vector.shape_cast %79 : vector<64xf32> to vector<64x1xf32>
    %cst_66 = arith.constant 3.906250e-03 : f32
    %81 = vector.broadcast %cst_66 : f32 to vector<64x1xf32>
    %82 = arith.mulf %80, %81 : vector<64x1xf32>
    %83 = vector.broadcast %82 : vector<64x1xf32> to vector<64x256xf32>
    %84 = arith.subf %76, %83 : vector<64x256xf32>
    %85 = arith.mulf %84, %84 : vector<64x256xf32>
    %cst_67 = arith.constant dense<0.000000e+00> : vector<64xf32>
    %86 = vector.multi_reduction <add>, %85, %cst_67 [1] : vector<64x256xf32> to vector<64xf32>
    %87 = vector.shape_cast %86 : vector<64xf32> to vector<64x1xf32>
    %cst_68 = arith.constant 3.906250e-03 : f32
    %88 = vector.broadcast %cst_68 : f32 to vector<64x1xf32>
    %89 = arith.mulf %87, %88 : vector<64x1xf32>
    %cst_69 = arith.constant 9.99999974E-6 : f32
    %90 = vector.broadcast %cst_69 : f32 to vector<64x1xf32>
    %91 = arith.addf %89, %90 : vector<64x1xf32>
    %92 = math.rsqrt %91 : vector<64x1xf32>
    %93 = arith.mulf %77, %92 : vector<64x1xf32>
    %94 = vector.broadcast %93 : vector<64x1xf32> to vector<64x256xf32>
    %95 = arith.mulf %84, %94 : vector<64x256xf32>
    %96 = vector.broadcast %78 : vector<64x1xf32> to vector<64x256xf32>
    %97 = arith.addf %95, %96 : vector<64x256xf32>
    %c0_70 = arith.constant 0 : index
    %c0_71 = arith.constant 0 : index
    %c0_72 = arith.constant 0 : index
    %98 = vector.load %arg1[%c0_70, %c0_71, %c0_72] : memref<1x64x256xf32, #tpu.memory_space<vmem>>, vector<1x64x256xf32>
    %99 = vector.shape_cast %98 : vector<1x64x256xf32> to vector<64x256xf32>
    %100 = arith.addf %99, %97 : vector<64x256xf32>
    %c0_73 = arith.constant 0 : index
    %c0_74 = arith.constant 0 : index
    %c0_75 = arith.constant 0 : index
    %101 = vector.load %arg5[%c0_73, %c0_74, %c0_75] : memref<1x64x256xf32, #tpu.memory_space<vmem>>, vector<1x64x256xf32>
    %102 = vector.shape_cast %101 : vector<1x64x256xf32> to vector<64x256xf32>
    %103 = vector.shape_cast %100 : vector<64x256xf32> to vector<1x64x256xf32>
    tpu.vector_store %arg5[%c0_73, %c0_74, %c0_75], %103 {strides = array<i32>} : memref<1x64x256xf32, #tpu.memory_space<vmem>>, vector<1x64x256xf32>,
    return
  }
  func.func @transform_0(%arg0: i32) -> (i32, i32, i32) {
    %c0_i32 = arith.constant 0 : i32
    %c0_i32_0 = arith.constant 0 : i32
    %c0_i32_1 = arith.constant 0 : i32
    return %arg0, %c0_i32, %c0_i32_0 : i32, i32, i32
  }
  func.func @transform_1(%arg0: i32) -> (i32, i32, i32) {
    %c0_i32 = arith.constant 0 : i32
    %c0_i32_0 = arith.constant 0 : i32
    %c0_i32_1 = arith.constant 0 : i32
    %c0_i32_2 = arith.constant 0 : i32
    return %c0_i32, %c0_i32_0, %c0_i32_1 : i32, i32, i32
  }
  func.func @transform_2(%arg0: i32) -> (i32, i32) {
    %c0_i32 = arith.constant 0 : i32
    %c0_i32_0 = arith.constant 0 : i32
    %c0_i32_1 = arith.constant 0 : i32
    return %c0_i32, %c0_i32_0 : i32, i32
  }
  func.func @transform_3(%arg0: i32) -> (i32, i32) {
    %c0_i32 = arith.constant 0 : i32
    %c0_i32_0 = arith.constant 0 : i32
    %c0_i32_1 = arith.constant 0 : i32
    return %c0_i32, %c0_i32_0 : i32, i32
  }
  func.func @transform_4(%arg0: i32) -> (i32, i32, i32) {
    %c0_i32 = arith.constant 0 : i32
    %c0_i32_0 = arith.constant 0 : i32
    %c0_i32_1 = arith.constant 0 : i32
    return %arg0, %c0_i32, %c0_i32_0 : i32, i32, i32
  }
}

</mosaic_0001>

<bundles_post_ra>
// kernel: residual_block_pallas.1
= control target key start
LH: loop header
LB: loop body
LE: loop exit
PB: predicated region body
PF: predicated region fallthrough
CT: control target
= control target key end

     0   :  { %s3114_s15 = smov 0   ;;  %s4597_s0 = inlined_call_operand.vmem [shape: f32[4,64,256], index: 0, kind: input, shape index: {}]   ;;  %s4598_s1 = inlined_call_operand.vmem [shape: bf16[6,64,192], index: 1, kind: input, shape index: {}]   ;;  %s4599_s2 = inlined_call_operand.vmem [shape: f32[64,4], index: 2, kind: input, shape index: {}]   ;;  %s4600_s3 = inlined_call_operand.vmem [shape: f32[2,256], index: 3, kind: input, shape index: {}]   ;;  %s4601_s4 = inlined_call_operand.vmem [shape: f32[4,64,256], index: 4, kind: output, shape index: {}]  }
   0x1 LB: > { %s2813_s16 = sadd.s32 4294967295, %s3079_s15   ;;  %p2817_p0 = scmp.ge.s32.totalorder %s3079_s15, 1  ;;  %s3079_s15 = sphi %s3114_s15, %s14_s15  }
   0x2   : > { %p162_p1 = scmp.lt.s32.totalorder %s3079_s15, 5 }
   0x4   : > { %p163_p2 = pnand %p2817_p0, %p162_p1 }
   0x5   : > { %p3124_p3 = scmp.lt.s32.totalorder (!%p163_p2), %s2813_s16, 3  ;;  %vm228_vm0 = vcmask (!%p163_p2), 130048   ;;  %vm252_vm1 = vcmask (!%p163_p2), 1048448   ;;  %vm226_vm2 = vcmask (!%p163_p2), 1048568   ;;  %v3081_v0 = vmov (!%p163_p2), 0   ;;  %s3082_s22 = smov (!%p163_p2), 16  }
   0x6   : > { %166 = sbr.rel (%p163_p2) target bundleno = 2118 (0x846), region = 36  ;;  %229 = vst.msk [vmem:[#allocation2 + $0x8] sm:$0xff] (!%p163_p2), %vm228_vm0, %v3081_v0  ;;  %231 = vst.msk [vmem:[#allocation2 + $0x28] sm:$0xff] (!%p163_p2), %vm228_vm0, %v3081_v0  ;;  %vm254_vm3 = vcmask (!%p163_p2), 7168   ;;  %2957 = vset.pattern.permute.xlu0 (!%p163_p2), %v3081_v0  ;;  %s3083_s23 = smov (!%p163_p2), 112   ;;  %vm319_vm4 = vcmask (!%p163_p2), 1047680  }
   0x7   : > { %233 = vst.msk [vmem:[#allocation2 + $0x48] sm:$0xff] (!%p163_p2), %vm228_vm0, %v3081_v0  ;;  %235 = vst.msk [vmem:[#allocation2 + $0x68] sm:$0xff] (!%p163_p2), %vm228_vm0, %v3081_v0  ;;  %s3084_s24 = smov (!%p163_p2), 1   ;;  %vm356_vm5 = vcmask (!%p163_p2), 916480   ;;  %s3085_s25 = smov (!%p163_p2), 127   ;;  %vm632_vm6 = vcmask (!%p163_p2), 523264  }
   0x8   : > { %270 = vst.msk [vmem:[#allocation2 + $0x110] sm:$0xff] (!%p163_p2), %vm252_vm1, %v3081_v0  ;;  %272 = vst.msk [vmem:[#allocation2 + $0x130] sm:$0xff] (!%p163_p2), %vm252_vm1, %v3081_v0  ;;  %vm1055_vm7 = vcmask (!%p163_p2), 1039360  }
   0x9   : > { %274 = vst.msk [vmem:[#allocation2 + $0x150] sm:$0xff] (!%p163_p2), %vm252_vm1, %v3081_v0  ;;  %276 = vst.msk [vmem:[#allocation2 + $0x170] sm:$0xff] (!%p163_p2), %vm252_vm1, %v3081_v0 }
   0xa   : > { %230 = vst.msk [vmem:[#allocation2 + $0x20] sm:$0xff] (!%p163_p2), %vm226_vm2, %v3081_v0  ;;  %227 = vst.msk [vmem:[#allocation2] sm:$0xff] (!%p163_p2), %vm226_vm2, %v3081_v0 }
   0xb   : > { %232 = vst.msk [vmem:[#allocation2 + $0x40] sm:$0xff] (!%p163_p2), %vm226_vm2, %v3081_v0  ;;  %234 = vst.msk [vmem:[#allocation2 + $0x60] sm:$0xff] (!%p163_p2), %vm226_vm2, %v3081_v0 }
   0xc   : > { %236 = vst.msk [vmem:[#allocation2 + $0x80] sm:$0xff] (!%p163_p2), %vm226_vm2, %v3081_v0  ;;  %238 = vst.msk [vmem:[#allocation2 + $0xa0] sm:$0xff] (!%p163_p2), %vm226_vm2, %v3081_v0 }
   0xd   : > { %240 = vst.msk [vmem:[#allocation2 + $0xc0] sm:$0xff] %vm226_vm2, %v3081_v0  ;;  %242 = vst.msk [vmem:[#allocation2 + $0xe0] sm:$0xff] %vm226_vm2, %v3081_v0  ;;  %s4604_s16 = smov (!%p3124_p3, %s2813_s16), 3 }
   0xe   : > { %244 = vst.msk [vmem:[#allocation2 + $0x100] sm:$0xff] %vm226_vm2, %v3081_v0  ;;  %246 = vst.msk [vmem:[#allocation2 + $0x120] sm:$0xff] %vm226_vm2, %v3081_v0  ;;  %s2937_s18 = sshll.u32 %s4604_s16, 7 }
   0xf   : > { %248 = vst.msk [vmem:[#allocation2 + $0x140] sm:$0xff] %vm226_vm2, %v3081_v0  ;;  %250 = vst.msk [vmem:[#allocation2 + $0x160] sm:$0xff] %vm226_vm2, %v3081_v0  ;;  %s3205_s21 = scalar_lea.vmem %s4597_s0, %s2937_s18 }
  0x10   : > { %257 = vst.msk [vmem:[#allocation2 + $0x38] sm:$0xff] %vm254_vm3, %v3081_v0  ;;  %255 = vst.msk [vmem:[#allocation2 + $0x18] sm:$0xff] %vm254_vm3, %v3081_v0  ;;  %v206_v1 = vld [vmem:[%s3205_s21 + $0x20] sm:$0xff]  ;;  %v208_v2 = vld [vmem:[%s3205_s21 + $0x30] sm:$0xff] }
  0x11   : > { %259 = vst.msk [vmem:[#allocation2 + $0x58] sm:$0xff] %vm254_vm3, %v3081_v0  ;;  %261 = vst.msk [vmem:[#allocation2 + $0x78] sm:$0xff] %vm254_vm3, %v3081_v0  ;;  %v202_v3 = vld [vmem:[%s3205_s21] sm:$0xff]  ;;  %v3210_v4 = vpack.c.bf16 %v208_v2, %v206_v1  ;;  %v204_v5 = vld [vmem:[%s3205_s21 + $0x10] sm:$0xff] }
  0x12   : > { %263 = vst.msk [vmem:[#allocation2 + $0x98] sm:$0xff] %vm254_vm3, %v3081_v0  ;;  %265 = vst.msk [vmem:[#allocation2 + $0xb8] sm:$0xff] %vm254_vm3, %v3081_v0  ;;  %v207_v6 = vld [vmem:[%s3205_s21 + $0x28] sm:$0xff]  ;;  %v209_v7 = vld [vmem:[%s3205_s21 + $0x38] sm:$0xff]  ;;  %v3215_v8 = vpack.c.bf16 %v204_v5, %v202_v3 }
  0x13   : > { %267 = vst.msk [vmem:[#allocation2 + $0xd8] sm:$0xff] %vm254_vm3, %v3081_v0  ;;  %269 = vst.msk [vmem:[#allocation2 + $0xf8] sm:$0xff] %vm254_vm3, %v3081_v0  ;;  %v3217_v9 = vpack.c.bf16 %v209_v7, %v207_v6  ;;  %v203_v10 = vld [vmem:[%s3205_s21 + $0x8] sm:$0xff]  ;;  %v205_v11 = vld [vmem:[%s3205_s21 + $0x18] sm:$0xff]  ;;  %290 = vrot.lane.b32.xlu1 %v3210_v4, %s3082_s22 }
  0x14   : > { %271 = vst.msk [vmem:[#allocation2 + $0x118] sm:$0xff] %vm254_vm3, %v3081_v0  ;;  %273 = vst.msk [vmem:[#allocation2 + $0x138] sm:$0xff] %vm254_vm3, %v3081_v0  ;;  %v211_v12 = vld [vmem:[%s3205_s21 + $0x48] sm:$0xff]  ;;  %v3224_v13 = vpack.c.bf16 %v205_v11, %v203_v10  ;;  %v213_v14 = vld [vmem:[%s3205_s21 + $0x58] sm:$0xff]  ;;  %286 = vrot.lane.b32.xlu0 %v3215_v8, %s3082_s22 }
  0x15   : > { %275 = vst.msk [vmem:[#allocation2 + $0x158] sm:$0xff] %vm254_vm3, %v3081_v0  ;;  %277 = vst.msk [vmem:[#allocation2 + $0x178] sm:$0xff] %vm254_vm3, %v3081_v0  ;;  %v210_v15 = vld [vmem:[%s3205_s21 + $0x40] sm:$0xff]  ;;  %v212_v16 = vld [vmem:[%s3205_s21 + $0x50] sm:$0xff]  ;;  %v3231_v17 = vpack.c.bf16 %v213_v14, %v211_v12 }
  0x16   : > { %v3233_v18 = vpack.c.bf16 %v212_v16, %v210_v15  ;;  %v215_v19 = vld [vmem:[%s3205_s21 + $0x68] sm:$0xff]  ;;  %v217_v20 = vld [vmem:[%s3205_s21 + $0x78] sm:$0xff]  ;;  %v214_v21 = vld [vmem:[%s3205_s21 + $0x60] sm:$0xff] }
  0x17   : > { %v3238_v22 = vpack.c.bf16 %v217_v20, %v215_v19  ;;  %v216_v23 = vld [vmem:[%s3205_s21 + $0x70] sm:$0xff]  ;;  %v428_v24 = vld [vmem:[#allocation2 + $0x20] sm:$0xff]  ;;  %292 = vrot.lane.b32.xlu1 %v3217_v9, %s3082_s22 }
  0x18   : > { %v427_v25 = vld [vmem:[#allocation2] sm:$0xff]  ;;  %v3241_v26 = vpack.c.bf16 %v216_v23, %v214_v21  ;;  %1498 = vst.msk [vmem:[#allocation2 + $0x20] sm:$0xff] %vm226_vm2, %v3081_v0  ;;  %288 = vrot.lane.b32.xlu0 %v3224_v13, %s3082_s22 }
  0x19   : > { %1496 = vst.msk [vmem:[#allocation2] sm:$0xff] %vm226_vm2, %v3081_v0  ;;  %v430_v27 = vld [vmem:[#allocation2 + $0x60] sm:$0xff]  ;;  %v3303_v33 = vld [vmem:[#allocation2 + $0x98] sm:$0xff] }
  0x1a   : > { %v429_v28 = vld [vmem:[#allocation2 + $0x40] sm:$0xff]  ;;  %1502 = vst.msk [vmem:[#allocation2 + $0x60] sm:$0xff] %vm226_vm2, %v3081_v0  ;;  %v3315_v34 = vld [vmem:[#allocation2 + $0xb8] sm:$0xff] }
  0x1b   : > { %v431_v29 = vld [vmem:[#allocation2 + $0x80] sm:$0xff]  ;;  %1500 = vst.msk [vmem:[#allocation2 + $0x40] sm:$0xff] %vm226_vm2, %v3081_v0  ;;  %296 = vrot.lane.b32.xlu1 %v3231_v17, %s3082_s22  ;;  %v3317_v35 = vld [vmem:[#allocation2 + $0xd8] sm:$0xff] }
  0x1c   : > { %1504 = vst.msk [vmem:[#allocation2 + $0x80] sm:$0xff] %vm226_vm2, %v3081_v0  ;;  %v432_v30 = vld [vmem:[#allocation2 + $0xa0] sm:$0xff]  ;;  %294 = vrot.lane.b32.xlu0 %v3233_v18, %s3082_s22  ;;  %v3323_v36 = vld [vmem:[#allocation2 + $0xf8] sm:$0xff] }
  0x1d   : > { %v433_v31 = vld [vmem:[#allocation2 + $0xc0] sm:$0xff]  ;;  %1506 = vst.msk [vmem:[#allocation2 + $0xa0] sm:$0xff] %vm226_vm2, %v3081_v0  ;;  %v3325_v37 = vld [vmem:[#allocation2 + $0x118] sm:$0xff] }
  0x1e   : > { %v434_v32 = vld [vmem:[#allocation2 + $0xe0] sm:$0xff]  ;;  %1508 = vst.msk [vmem:[#allocation2 + $0xc0] sm:$0xff] %vm226_vm2, %v3081_v0  ;;  %v3331_v38 = vld [vmem:[#allocation2 + $0x138] sm:$0xff] }
  0x1f   : > { %1510 = vst.msk [vmem:[#allocation2 + $0xe0] sm:$0xff] %vm226_vm2, %v3081_v0  ;;  %300 = vrot.lane.b32.xlu1 %v3238_v22, %s3082_s22  ;;  %v3333_v39 = vld [vmem:[#allocation2 + $0x158] sm:$0xff] }
  0x20   : > { %298 = vrot.lane.b32.xlu0 %v3241_v26, %s3082_s22  ;;  %1529 = vst.msk [vmem:[#allocation2 + $0x98] sm:$0xff] %vm254_vm3, %v3081_v0  ;;  %1531 = vst.msk [vmem:[#allocation2 + $0xb8] sm:$0xff] %vm254_vm3, %v3081_v0  ;;  %v3339_v40 = vld [vmem:[#allocation2 + $0x178] sm:$0xff] }
  0x21   : > { %1533 = vst.msk [vmem:[#allocation2 + $0xd8] sm:$0xff] %vm254_vm3, %v3081_v0  ;;  %1535 = vst.msk [vmem:[#allocation2 + $0xf8] sm:$0xff] %vm254_vm3, %v3081_v0 }
  0x22   : > { %1537 = vst.msk [vmem:[#allocation2 + $0x118] sm:$0xff] %vm254_vm3, %v3081_v0  ;;  %1539 = vst.msk [vmem:[#allocation2 + $0x138] sm:$0xff] %vm254_vm3, %v3081_v0 }
  0x23   : > { %342 = vrot.lane.b32.xlu1 %v3224_v13, %s3083_s23  ;;  %1541 = vst.msk [vmem:[#allocation2 + $0x158] sm:$0xff] %vm254_vm3, %v3081_v0  ;;  %1543 = vst.msk [vmem:[#allocation2 + $0x178] sm:$0xff] %vm254_vm3, %v3081_v0 }
  0x24   : > { %340 = vrot.lane.b32.xlu0 %v3215_v8, %s3083_s23 }
  0x27   : > { %346 = vrot.lane.b32.xlu1 %v3217_v9, %s3083_s23 }
  0x28   : > { %344 = vrot.lane.b32.xlu0 %v3210_v4, %s3083_s23 }
  0x2b   : > { %350 = vrot.lane.b32.xlu1 %v3231_v17, %s3083_s23 }
  0x2c   : > { %348 = vrot.lane.b32.xlu0 %v3233_v18, %s3083_s23 }
  0x2f   : > { %354 = vrot.lane.b32.xlu1 %v3238_v22, %s3083_s23 }
  0x30   : > { %352 = vrot.lane.b32.xlu0 %v3241_v26, %s3083_s23 }
  0x33   : > { %517 = vrot.lane.b32.xlu1 %v428_v24, %s3084_s24 }
  0x34   : > { %511 = vrot.lane.b32.xlu0 %v427_v25, %s3084_s24  ;;  %v2971_v25 = vld [vmem:[%s4598_s1 + $0x4] ss:$8 sps:$4 sm:$0xff]  }
  0x35   : > { %2839 = vmatprep.mubr.msk.bf16.mxu0 %vm632_vm6, %v2971_v25 }
  0x37   : > { %529 = vrot.lane.b32.xlu1 %v430_v27, %s3084_s24  ;;  %v2972_v27 = vld [vmem:[%s4598_s1 + $0x40] ss:$8 sps:$4 sm:$0xff]  }
  0x38   : > { %523 = vrot.lane.b32.xlu0 %v429_v28, %s3084_s24  ;;  %v2974_v28 = vld [vmem:[%s4598_s1 + $0x44] ss:$8 sps:$4 sm:$0xff]  }
  0x39   : > { %2851 = vmatprep.mubr.msk.bf16.mxu1 %vm632_vm6, %v2974_v28 }
  0x3b   : > { %539 = vrot.lane.b32.xlu1 %v3224_v13, %s3084_s24 }
  0x3c   : > { %537 = vrot.lane.b32.xlu0 %v3215_v8, %s3084_s24 }
  0x3f   : > { %543 = vrot.lane.b32.xlu1 %v3210_v4, %s3084_s24 }
  0x40   : > { %535 = vrot.lane.b32.xlu0 %v431_v29, %s3084_s24 }
  0x43   : > { %541 = vrot.lane.b32.xlu1 %v432_v30, %s3084_s24  ;;  %v2978_v30 = vld [vmem:[%s4598_s1 + $0x54] ss:$8 sps:$4 sm:$0xff]  }
  0x44   : > { %545 = vrot.lane.b32.xlu0 %v3217_v9, %s3084_s24 }
  0x47   : > { %551 = vrot.lane.b32.xlu1 %v3231_v17, %s3084_s24 }
  0x48   : > { %549 = vrot.lane.b32.xlu0 %v3233_v18, %s3084_s24 }
  0x4b   : > { %555 = vrot.lane.b32.xlu1 %v3241_v26, %s3084_s24 }
  0x4c   : > { %547 = vrot.lane.b32.xlu0 %v433_v31, %s3084_s24  ;;  %v2980_v31 = vld [vmem:[%s4598_s1 + $0x50] ss:$8 sps:$4 sm:$0xff]  }
  0x4f   : > { %553 = vrot.lane.b32.xlu1 %v434_v32, %s3084_s24 }
  0x50   : > { %557 = vrot.lane.b32.xlu0 %v3238_v22, %s3084_s24 }
  0x85   : > { %v291_v41 = vpop.permute.xlu1 %290 }
  0x86   : > { %323 = vst.msk [vmem:[#allocation2 + $0x28] sm:$0xff] %vm319_vm4, %v291_v41  ;;  %v287_v42 = vpop.permute.xlu0 %286 }
  0x87   : > { %320 = vst.msk [vmem:[#allocation2 + $0x8] sm:$0xff] %vm319_vm4, %v287_v42 }
  0x89   : > { %v293_v43 = vpop.permute.xlu1 %292 }
  0x8a   : > { %v3346_v44 = vsel %vm228_vm0, %v291_v41, %v293_v43  ;;  %325 = vst.msk [vmem:[#allocation2 + $0x38] sm:$0xff] %vm228_vm0, %v293_v43  ;;  %v289_v45 = vpop.permute.xlu0 %288 }
  0x8b   : > { %v3350_v46 = vsel %vm228_vm0, %v287_v42, %v289_v45  ;;  %322 = vst.msk [vmem:[#allocation2 + $0x18] sm:$0xff] %vm228_vm0, %v289_v45 }
  0x8c   : > { %793 = vmatprep.subr.bf16.mxu1 %v3350_v46 }
  0x8d   : > { %v297_v47 = vpop.permute.xlu1 %296  ;;  %v3354_v48 = vld [vmem:[#allocation2 + $0x28] sm:$0xff] }
  0x8e   : > { %328 = vst.msk [vmem:[#allocation2 + $0x58] sm:$0xff] %vm228_vm0, %v297_v47  ;;  %v295_v49 = vpop.permute.xlu0 %294  ;;  %519 = vrot.lane.b32.xlu1 %v3354_v48, %s3084_s24  ;;  %v3359_v50 = vld [vmem:[#allocation2 + $0x8] sm:$0xff]  ;;  %1499 = vst.msk [vmem:[#allocation2 + $0x28] sm:$0xff] %vm228_vm0, %v3081_v0 }
  0x8f   : > { %v3364_v51 = vsel %vm228_vm0, %v295_v49, %v297_v47  ;;  %326 = vst.msk [vmem:[#allocation2 + $0x48] sm:$0xff] %vm319_vm4, %v295_v49  ;;  %513 = vrot.lane.b32.xlu0 %v3359_v50, %s3084_s24  ;;  %794 = vmatpush1.bf16.msra.mxu1 %v3359_v50 }
  0x90   : > { %1497 = vst.msk [vmem:[#allocation2 + $0x8] sm:$0xff] %vm228_vm0, %v3081_v0  ;;  %795 = vmatprep.subr.bf16.mxu1 %v3346_v44 }
  0x91   : > { %v301_v52 = vpop.permute.xlu1 %300  ;;  %v3373_v53 = vld [vmem:[#allocation2 + $0x38] sm:$0xff] }
  0x92   : > { %331 = vst.msk [vmem:[#allocation2 + $0x78] sm:$0xff] %vm228_vm0, %v301_v52  ;;  %v299_v54 = vpop.permute.xlu0 %298  ;;  %v3376_v55 = vld [vmem:[#allocation2 + $0x18] sm:$0xff] }
  0x93   : > { %1523 = vst.msk [vmem:[#allocation2 + $0x38] sm:$0xff] %vm254_vm3, %v3081_v0  ;;  %v3381_v56 = vsel %vm228_vm0, %v299_v54, %v301_v52  ;;  %796 = vmatpush1.bf16.msra.mxu1 %v3354_v48  ;;  %1521 = vst.msk [vmem:[#allocation2 + $0x18] sm:$0xff] %vm254_vm3, %v3081_v0 }
  0x94   : > { %329 = vst.msk [vmem:[#allocation2 + $0x68] sm:$0xff] %vm319_vm4, %v299_v54  ;;  %797 = vmatprep.subr.bf16.mxu1 %v3364_v51 }
  0x95   : > { %v343_v57 = vpop.permute.xlu1 %342  ;;  %v3388_v58 = vld [vmem:[#allocation2 + $0x58] sm:$0xff] }
  0x96   : > { %376 = vst.msk [vmem:[#allocation2 + $0x110] sm:$0xff] %vm356_vm5, %v343_v57  ;;  %v341_v59 = vpop.permute.xlu0 %340  ;;  %v3391_v60 = vld [vmem:[#allocation2 + $0x48] sm:$0xff] }
  0x97   : > { %1525 = vst.msk [vmem:[#allocation2 + $0x58] sm:$0xff] %vm254_vm3, %v3081_v0  ;;  %v3396_v61 = vsel %vm356_vm5, %v341_v59, %v343_v57  ;;  %525 = vrot.lane.b32.xlu0 %v3391_v60, %s3084_s24  ;;  %798 = vmatpush1.bf16.msra.mxu1 %v3391_v60 }
  0x98   : > { %373 = vst.msk [vmem:[#allocation2 + $0x100] sm:$0xff] %vm252_vm1, %v341_v59  ;;  %799 = vmatprep.subr.bf16.mxu1 %v3381_v56 }
  0x99   : > { %1501 = vst.msk [vmem:[#allocation2 + $0x48] sm:$0xff] %vm228_vm0, %v3081_v0  ;;  %v347_v62 = vpop.permute.xlu1 %346  ;;  %v3405_v63 = vld [vmem:[#allocation2 + $0x78] sm:$0xff] }
  0x9a   : > { %379 = vst.msk [vmem:[#allocation2 + $0x130] sm:$0xff] %vm356_vm5, %v347_v62  ;;  %v345_v1 = vpop.permute.xlu0 %344 }
  0x9b   : > { %v3408_v2 = vld [vmem:[#allocation2 + $0x68] sm:$0xff]  ;;  %1527 = vst.msk [vmem:[#allocation2 + $0x78] sm:$0xff] %vm254_vm3, %v3081_v0  ;;  %v3413_v3 = vsel %vm356_vm5, %v345_v1, %v347_v62 }
  0x9c   : > { %377 = vst.msk [vmem:[#allocation2 + $0x120] sm:$0xff] %vm252_vm1, %v345_v1  ;;  %531 = vrot.lane.b32.xlu1 %v3408_v2, %s3084_s24  ;;  %800 = vmatpush1.bf16.msra.mxu1 %v3408_v2 }
  0x9d   : > { %1503 = vst.msk [vmem:[#allocation2 + $0x68] sm:$0xff] %vm228_vm0, %v3081_v0  ;;  %801 = vmatprep.subr.bf16.mxu1 %v3224_v13  ;;  %v3422_v5 = vld [vmem:[#allocation2 + $0x110] sm:$0xff]  ;;  %v351_v6 = vpop.permute.xlu1 %350 }
  0x9e   : > { %382 = vst.msk [vmem:[#allocation2 + $0x150] sm:$0xff] %vm356_vm5, %v351_v6  ;;  %v349_v10 = vpop.permute.xlu0 %348 }
  0x9f   : > { %v435_v7 = vld [vmem:[#allocation2 + $0x100] sm:$0xff]  ;;  %1536 = vst.msk [vmem:[#allocation2 + $0x110] sm:$0xff] %vm252_vm1, %v3081_v0  ;;  %v3433_v11 = vsel %vm356_vm5, %v349_v10, %v351_v6  ;;  %380 = vst.msk [vmem:[#allocation2 + $0x140] sm:$0xff] %vm252_vm1, %v349_v10 }
  0xa0   : > { %563 = vrot.lane.b32.xlu1 %v3422_v5, %s3084_s24  ;;  %559 = vrot.lane.b32.xlu0 %v435_v7, %s3084_s24  ;;  %1512 = vst.msk [vmem:[#allocation2 + $0x100] sm:$0xff] %vm226_vm2, %v3081_v0 }
  0xa1   : > { %802 = vmatpush1.bf16.msra.mxu1 %v3215_v8  ;;  %v3437_v12 = vld [vmem:[#allocation2 + $0x130] sm:$0xff]  ;;  %v355_v14 = vpop.permute.xlu1 %354 }
  0xa2   : > { %803 = vmatprep.subr.bf16.mxu1 %v3217_v9  ;;  %385 = vst.msk [vmem:[#allocation2 + $0x170] sm:$0xff] %vm356_vm5, %v355_v14  ;;  %v353_v15 = vpop.permute.xlu0 %352 }
  0xa3   : > { %v436_v16 = vld [vmem:[#allocation2 + $0x120] sm:$0xff]  ;;  %1538 = vst.msk [vmem:[#allocation2 + $0x130] sm:$0xff] %vm252_vm1, %v3081_v0  ;;  %v3448_v19 = vsel %vm356_vm5, %v353_v15, %v355_v14  ;;  %383 = vst.msk [vmem:[#allocation2 + $0x160] sm:$0xff] %vm252_vm1, %v353_v15 }
  0xa4   : > { %515 = vrot.lane.b32.xlu1 %v3350_v46, %s3084_s24  ;;  %569 = vrot.lane.b32.xlu0 %v3437_v12, %s3084_s24  ;;  %1514 = vst.msk [vmem:[#allocation2 + $0x120] sm:$0xff] %vm226_vm2, %v3081_v0 }
  0xa5   : > { %804 = vmatpush1.bf16.msra.mxu1 %v3210_v4  ;;  %v3455_v20 = vld [vmem:[#allocation2 + $0x150] sm:$0xff] }
  0xa6   : > { %805 = vmatprep.subr.bf16.mxu1 %v3231_v17  ;;  %v437_v21 = vld [vmem:[#allocation2 + $0x140] sm:$0xff]  ;;  %1540 = vst.msk [vmem:[#allocation2 + $0x150] sm:$0xff] %vm252_vm1, %v3081_v0  ;;  %v512_v29 = vpop.permute.xlu0 %511 }
  0xa7   : > { %1516 = vst.msk [vmem:[#allocation2 + $0x140] sm:$0xff] %vm226_vm2, %v3081_v0 }
  0xa8   : > { %565 = vrot.lane.b32.xlu1 %v436_v16, %s3084_s24  ;;  %521 = vrot.lane.b32.xlu0 %v3346_v44, %s3084_s24 }
  0xa9   : > { %806 = vmatpush1.bf16.msra.mxu1 %v3233_v18  ;;  %v3465_v23 = vld [vmem:[#allocation2 + $0x170] sm:$0xff] }
  0xaa   : > { %807 = vmatprep.subr.bf16.mxu1 %v3238_v22  ;;  %v438_v24 = vld [vmem:[#allocation2 + $0x160] sm:$0xff]  ;;  %1542 = vst.msk [vmem:[#allocation2 + $0x170] sm:$0xff] %vm252_vm1, %v3081_v0 }
  0xab   : > { %1518 = vst.msk [vmem:[#allocation2 + $0x160] sm:$0xff] %vm226_vm2, %v3081_v0 }
  0xac   : > { %527 = vrot.lane.b32.xlu1 %v3364_v51, %s3084_s24  ;;  %571 = vrot.lane.b32.xlu0 %v437_v21, %s3084_s24 }
  0xad   : > { %808 = vmatpush1.bf16.msra.mxu1 %v3241_v26 }
  0xae   : > { %809 = vmatprep.subr.bf16.mxu1 %v3422_v5 }
  0xb0   : > { %575 = vrot.lane.b32.xlu1 %v3455_v20, %s3084_s24  ;;  %581 = vrot.lane.b32.xlu0 %v3465_v23, %s3084_s24 }
  0xb1   : > { %810 = vmatpush1.bf16.msra.mxu1 %v3396_v61 }
  0xb2   : > { %811 = vmatprep.subr.bf16.mxu1 %v3437_v12 }
  0xb4   : > { %577 = vrot.lane.b32.xlu1 %v438_v24, %s3084_s24  ;;  %533 = vrot.lane.b32.xlu0 %v3381_v56, %s3084_s24 }
  0xb5   : > { %812 = vmatpush1.bf16.msra.mxu1 %v3413_v3 }
  0xb6   : > { %813 = vmatprep.subr.bf16.mxu1 %v3455_v20 }
  0xb8   : > { %987 = vrot.lane.b32.xlu1 %v3376_v55, %s3085_s25  ;;  %983 = vrot.lane.b32.xlu0 %v3359_v50, %s3085_s25 }
  0xb9   : > { %814 = vmatpush1.bf16.msra.mxu1 %v3433_v11 }
  0xba   : > { %815 = vmatprep.subr.bf16.mxu1 %v3465_v23 }
  0xbc   : > { %989 = vrot.lane.b32.xlu1 %v3354_v48, %s3085_s25  ;;  %993 = vrot.lane.b32.xlu0 %v3373_v53, %s3085_s25 }
  0xbd   : > { %816 = vmatpush1.bf16.msra.mxu1 %v3448_v19 }
  0xc0   : > { %999 = vrot.lane.b32.xlu1 %v3388_v58, %s3085_s25  ;;  %995 = vrot.lane.b32.xlu0 %v3391_v60, %s3085_s25 }
  0xc1   : > { %826 = vmatmul.mubr.bf16.vlgmr.msra.gmra.mrb[0].mxu1 %v2972_v27 }
  0xc2   : > { %2852 = vmatprep.mubr.msk.bf16.mxu1 %vm632_vm6, %v2978_v30 }
  0xc4   : > { %1001 = vrot.lane.b32.xlu1 %v3408_v2, %s3085_s25  ;;  %1005 = vrot.lane.b32.xlu0 %v3405_v63, %s3085_s25 }
  0xc8   : > { %567 = vrot.lane.b32.xlu1 %v3413_v3, %s3084_s24  ;;  %561 = vrot.lane.b32.xlu0 %v3396_v61, %s3084_s24 }
  0xc9   : > { %836 = vmatmul.mubr.bf16.gmra.mrb[4].mxu1 %v2980_v31 }
  0xcc   : > { %1011 = vrot.lane.b32.xlu1 %v3303_v33, %s3085_s25  ;;  %1009 = vrot.lane.b32.xlu0 %v3224_v13, %s3085_s25  ;;  %v3538_v13 = vpop.permute.xlu1 %517  ;;  %v2984_v33 = vld [vmem:[%s4598_s1 + $0x64] ss:$8 sps:$4 sm:$0xff]  }
  0xcd   : > { %2853 = vmatprep.mubr.msk.bf16.mxu1 %vm632_vm6, %v2984_v33 }
  0xd0   : > { %579 = vrot.lane.b32.xlu1 %v3448_v19, %s3084_s24  ;;  %573 = vrot.lane.b32.xlu0 %v3433_v11, %s3084_s24 }
  0xd4   : > { %1015 = vrot.lane.b32.xlu1 %v3217_v9, %s3085_s25  ;;  %1007 = vrot.lane.b32.xlu0 %v3215_v8, %s3085_s25  ;;  %v3548_v8 = vpop.permute.xlu1 %529  ;;  %v3550_v9 = vpop.permute.xlu0 %523 }
  0xd8   : > { %991 = vrot.lane.b32.xlu1 %v3346_v44, %s3085_s25  ;;  %985 = vrot.lane.b32.xlu0 %v3350_v46, %s3085_s25  ;;  %v3565_v32 = vpop.permute.xlu0 %537 }
  0xdc   : > { %1003 = vrot.lane.b32.xlu1 %v3381_v56, %s3085_s25  ;;  %997 = vrot.lane.b32.xlu0 %v3364_v51, %s3085_s25 }
  0xe0   : > { %1013 = vrot.lane.b32.xlu1 %v3210_v4, %s3085_s25  ;;  %1017 = vrot.lane.b32.xlu0 %v3315_v34, %s3085_s25  ;;  %v3563_v4 = vpop.permute.xlu1 %539  ;;  %v2986_v34 = vld [vmem:[%s4598_s1 + $0x60] ss:$8 sps:$4 sm:$0xff]  }
  0xe1   : > { %846 = vmatmul.mubr.bf16.gmra.mrb[8].mxu1 %v2986_v34 }
  0xe4   : > { %1023 = vrot.lane.b32.xlu1 %v3317_v35, %s3085_s25  ;;  %1021 = vrot.lane.b32.xlu0 %v3231_v17, %s3085_s25  ;;  %v3582_v17 = vpop.permute.xlu1 %543 }
  0xe8   : > { %1027 = vrot.lane.b32.xlu1 %v3238_v22, %s3085_s25  ;;  %1019 = vrot.lane.b32.xlu0 %v3233_v18, %s3085_s25  ;;  %v3584_v22 = vpop.permute.xlu0 %535  ;;  %v2990_v18 = vld [vmem:[%s4598_s1 + $0x74] ss:$8 sps:$4 sm:$0xff]   ;;  %v3593_v35 = vpop.permute.xlu1 %541 }
  0xe9   : > { %2854 = vmatprep.mubr.msk.bf16.mxu1 %vm632_vm6, %v2990_v18  ;;  %v592_v10 = vsel %vm254_vm3, %v3584_v22, %v3565_v32  ;;  %v594_v15 = vsel %vm254_vm3, %v3593_v35, %v3582_v17 }
  0xec   : > { %1025 = vrot.lane.b32.xlu1 %v3241_v26, %s3085_s25  ;;  %1029 = vrot.lane.b32.xlu0 %v3323_v36, %s3085_s25  ;;  %v546_v26 = vpop.permute.xlu0 %545  ;;  %v2992_v36 = vld [vmem:[%s4598_s1 + $0x70] ss:$8 sps:$4 sm:$0xff]  }
  0xed   : > { %856 = vmatmul.mubr.bf16.gmra.mrb[12].mxu1 %v2992_v36  ;;  %v2969_v36 = vld [vmem:[%s4598_s1] ss:$8 sps:$4 sm:$0xff]  }
  0xf0   : > { %1035 = vrot.lane.b32.xlu1 %v3325_v37, %s3085_s25  ;;  %1033 = vrot.lane.b32.xlu0 %v3422_v5, %s3085_s25  ;;  %v552_v37 = vpop.permute.xlu1 %551  ;;  %v550_v41 = vpop.permute.xlu0 %549  ;;  %v593_v5 = vsel %vm254_vm3, %v3565_v32, %v3563_v4 }
  0xf1   : > { %v597_v16 = vsel %vm254_vm3, %v550_v41, %v552_v37  ;;  %v2975_v37 = vld [vmem:[%s4598_s1 + $0x14] ss:$8 sps:$4 sm:$0xff]  }
  0xf4   : > { %1039 = vrot.lane.b32.xlu1 %v3437_v12, %s3085_s25  ;;  %1031 = vrot.lane.b32.xlu0 %v3396_v61, %s3085_s25  ;;  %v3611_v42 = vpop.permute.xlu1 %555  ;;  %v548_v43 = vpop.permute.xlu0 %547 }
  0xf5   : > { %v596_v21 = vsel %vm254_vm3, %v548_v43, %v550_v41 }
  0xf8   : > { %1037 = vrot.lane.b32.xlu1 %v3413_v3, %s3085_s25  ;;  %1041 = vrot.lane.b32.xlu0 %v3331_v38, %s3085_s25  ;;  %v554_v44 = vpop.permute.xlu1 %553  ;;  %v558_v45 = vpop.permute.xlu0 %557 }
  0xf9   : > { %v598_v27 = vsel %vm254_vm3, %v554_v44, %v3611_v42 }
  0xfc   : > { %1047 = vrot.lane.b32.xlu1 %v3333_v39, %s3085_s25  ;;  %1045 = vrot.lane.b32.xlu0 %v3455_v20, %s3085_s25 }
 0x100   : > { %1051 = vrot.lane.b32.xlu1 %v3465_v23, %s3085_s25  ;;  %1043 = vrot.lane.b32.xlu0 %v3433_v11, %s3085_s25  ;;  %v520_v38 = vpop.permute.xlu1 %519  ;;  %v595_v11 = vsel %vm254_vm3, %v3582_v17, %v546_v26  ;;  %v599_v23 = vsel %vm254_vm3, %v3611_v42, %v558_v45 }
 0x101   : > { %v514_v39 = vpop.permute.xlu0 %513 }
 0x102   : > { %v584_v53 = vsel %vm254_vm3, %v512_v29, %v514_v39 }
 0x104   : > { %1049 = vrot.lane.b32.xlu1 %v3448_v19, %s3085_s25  ;;  %1053 = vrot.lane.b32.xlu0 %v3339_v40, %s3085_s25  ;;  %v586_v40 = vsel %vm254_vm3, %v3538_v13, %v520_v38 }
 0x109   : > { %v526_v46 = vpop.permute.xlu0 %525 }
 0x10a   : > { %v588_v60 = vsel %vm254_vm3, %v3550_v9, %v526_v46 }
 0x10e   : > { %v532_v47 = vpop.permute.xlu1 %531 }
 0x10f   : > { %v590_v3 = vsel %vm254_vm3, %v3548_v8, %v532_v47 }
 0x112   : > { %v564_v48 = vpop.permute.xlu1 %563  ;;  %v560_v49 = vpop.permute.xlu0 %559 }
 0x116   : > { %v516_v50 = vpop.permute.xlu1 %515  ;;  %v570_v51 = vpop.permute.xlu0 %569 }
 0x117   : > { %v585_v52 = vsel %vm254_vm3, %v514_v39, %v516_v50 }
 0x118   : > { %645 = vmatprep.subr.bf16.mxu0 %v585_v52 }
 0x119   : > { %646 = vmatpush1.bf16.msra.mxu0 %v584_v53 }
 0x11a   : > { %v566_v54 = vpop.permute.xlu1 %565  ;;  %v522_v55 = vpop.permute.xlu0 %521 }
 0x11b   : > { %v587_v56 = vsel %vm254_vm3, %v520_v38, %v522_v55 }
 0x11c   : > { %647 = vmatprep.subr.bf16.mxu0 %v587_v56 }
 0x11d   : > { %648 = vmatpush1.bf16.msra.mxu0 %v586_v40  ;;  %v2983_v40 = vld [vmem:[%s4598_s1 + $0x20] ss:$8 sps:$4 sm:$0xff]  }
 0x11e   : > { %v528_v57 = vpop.permute.xlu1 %527  ;;  %v572_v58 = vpop.permute.xlu0 %571 }
 0x11f   : > { %v589_v59 = vsel %vm254_vm3, %v526_v46, %v528_v57 }
 0x120   : > { %649 = vmatprep.subr.bf16.mxu0 %v589_v59 }
 0x121   : > { %650 = vmatpush1.bf16.msra.mxu0 %v588_v60 }
 0x122   : > { %v576_v61 = vpop.permute.xlu1 %575  ;;  %v582_v62 = vpop.permute.xlu0 %581 }
 0x126   : > { %v578_v63 = vpop.permute.xlu1 %577  ;;  %v534_v1 = vpop.permute.xlu0 %533 }
 0x127   : > { %v591_v2 = vsel %vm254_vm3, %v532_v47, %v534_v1  ;;  %v2977_v47 = vld [vmem:[%s4598_s1 + $0x10] ss:$8 sps:$4 sm:$0xff]  }
 0x128   : > { %651 = vmatprep.subr.bf16.mxu0 %v591_v2 }
 0x129   : > { %652 = vmatpush1.bf16.msra.mxu0 %v590_v3  ;;  %v2989_v3 = vld [vmem:[%s4598_s1 + $0x30] ss:$8 sps:$4 sm:$0xff]  }
 0x12a   : > { %v988_v6 = vpop.permute.xlu1 %987  ;;  %653 = vmatprep.subr.bf16.mxu0 %v593_v5  ;;  %v984_v7 = vpop.permute.xlu0 %983 }
 0x12d   : > { %654 = vmatpush1.bf16.msra.mxu0 %v592_v10 }
 0x12e   : > { %v990_v12 = vpop.permute.xlu1 %989  ;;  %655 = vmatprep.subr.bf16.mxu0 %v595_v11  ;;  %v994_v14 = vpop.permute.xlu0 %993 }
 0x131   : > { %656 = vmatpush1.bf16.msra.mxu0 %v594_v15 }
 0x132   : > { %v1000_v19 = vpop.permute.xlu1 %999  ;;  %657 = vmatprep.subr.bf16.mxu0 %v597_v16  ;;  %v996_v20 = vpop.permute.xlu0 %995 }
 0x135   : > { %658 = vmatpush1.bf16.msra.mxu0 %v596_v21 }
 0x136   : > { %v1002_v24 = vpop.permute.xlu1 %1001  ;;  %659 = vmatprep.subr.bf16.mxu0 %v599_v23  ;;  %v1006_v25 = vpop.permute.xlu0 %1005 }
 0x139   : > { %660 = vmatpush1.bf16.msra.mxu0 %v598_v27 }
 0x13a   : > { %v568_v28 = vpop.permute.xlu1 %567  ;;  %v562_v13 = vpop.permute.xlu0 %561 }
 0x13b   : > { %v601_v29 = vsel %vm254_vm3, %v562_v13, %v564_v48  ;;  %v600_v8 = vsel %vm254_vm3, %v560_v49, %v562_v13  ;;  %v603_v9 = vsel %vm254_vm3, %v568_v28, %v570_v51  ;;  %v602_v4 = vsel %vm254_vm3, %v566_v54, %v568_v28  ;;  %v2981_v49 = vld [vmem:[%s4598_s1 + $0x24] ss:$8 sps:$4 sm:$0xff]  }
 0x13c   : > { %661 = vmatprep.subr.bf16.mxu0 %v601_v29 }
 0x13d   : > { %662 = vmatpush1.bf16.msra.mxu0 %v600_v8 }
 0x13e   : > { %v1012_v30 = vpop.permute.xlu1 %1011  ;;  %663 = vmatprep.subr.bf16.mxu0 %v603_v9  ;;  %v1010_v31 = vpop.permute.xlu0 %1009 }
 0x13f   : > { %v1065_v57 = vsel %vm1055_vm7, %v1010_v31, %v1012_v30 }
 0x141   : > { %664 = vmatpush1.bf16.msra.mxu0 %v602_v4 }
 0x142   : > { %v580_v32 = vpop.permute.xlu1 %579  ;;  %v574_v33 = vpop.permute.xlu0 %573 }
 0x143   : > { %v605_v34 = vsel %vm254_vm3, %v574_v33, %v576_v61  ;;  %v604_v17 = vsel %vm254_vm3, %v572_v58, %v574_v33  ;;  %v607_v22 = vsel %vm254_vm3, %v580_v32, %v582_v62  ;;  %v606_v26 = vsel %vm254_vm3, %v578_v63, %v580_v32  ;;  %v2987_v58 = vld [vmem:[%s4598_s1 + $0x34] ss:$8 sps:$4 sm:$0xff]   ;;  %v2993_v33 = vld [vmem:[%s4598_s1 + $0x80] ss:$8 sps:$4 sm:$0xff]  }
 0x144   : > { %665 = vmatprep.subr.bf16.mxu0 %v605_v34  ;;  %v2996_v34 = vld [vmem:[%s4598_s1 + $0x94] ss:$8 sps:$4 sm:$0xff]  }
 0x145   : > { %666 = vmatpush1.bf16.msra.mxu0 %v604_v17  ;;  %v2998_v17 = vld [vmem:[%s4598_s1 + $0x90] ss:$8 sps:$4 sm:$0xff]  }
 0x146   : > { %v1016_v18 = vpop.permute.xlu1 %1015  ;;  %667 = vmatprep.subr.bf16.mxu0 %v607_v22  ;;  %v1008_v35 = vpop.permute.xlu0 %1007  ;;  %v2999_v22 = vld [vmem:[%s4598_s1 + $0xa4] ss:$8 sps:$4 sm:$0xff]  }
 0x147   : > { %v1064_v61 = vsel %vm1055_vm7, %v1008_v35, %v1010_v31  ;;  %v3002_v35 = vld [vmem:[%s4598_s1 + $0xb4] ss:$8 sps:$4 sm:$0xff]  }
 0x149   : > { %668 = vmatpush1.bf16.msra.mxu0 %v606_v26  ;;  %v3004_v26 = vld [vmem:[%s4598_s1 + $0xb0] ss:$8 sps:$4 sm:$0xff]  }
 0x14a   : > { %v992_v41 = vpop.permute.xlu1 %991  ;;  %v986_v42 = vpop.permute.xlu0 %985 }
 0x14b   : > { %v1057_v43 = vsel %vm1055_vm7, %v986_v42, %v988_v6  ;;  %v1056_v44 = vsel %vm1055_vm7, %v984_v7, %v986_v42  ;;  %v1059_v45 = vsel %vm1055_vm7, %v992_v41, %v994_v14  ;;  %v1058_v46 = vsel %vm1055_vm7, %v990_v12, %v992_v41  ;;  %v2995_v6 = vld [vmem:[%s4598_s1 + $0x84] ss:$8 sps:$4 sm:$0xff]  }
 0x14c   : > { %678 = vmatmul.mubr.bf16.vlgmr.msra.gmra.mrb[0].mxu0 %v2969_v36  ;;  %1116 = vmatprep.subr.bf16.mxu0 %v1057_v43 }
 0x14d   : > { %1117 = vmatpush1.bf16.msra.mxu0 %v1056_v44  ;;  %2840 = vmatprep.mubr.msk.bf16.mxu0 %vm632_vm6, %v2975_v37 }
 0x14e   : > { %v1004_v38 = vpop.permute.xlu1 %1003  ;;  %1118 = vmatprep.subr.bf16.mxu0 %v1059_v45  ;;  %v998_v39 = vpop.permute.xlu0 %997 }
 0x14f   : > { %v1061_v48 = vsel %vm1055_vm7, %v998_v39, %v1000_v19  ;;  %v1060_v52 = vsel %vm1055_vm7, %v996_v20, %v998_v39  ;;  %v1063_v53 = vsel %vm1055_vm7, %v1004_v38, %v1006_v25  ;;  %v1062_v56 = vsel %vm1055_vm7, %v1002_v24, %v1004_v38 }
 0x151   : > { %1119 = vmatpush1.bf16.msra.mxu0 %v1058_v46 }
 0x152   : > { %v1014_v50 = vpop.permute.xlu1 %1013  ;;  %1120 = vmatprep.subr.bf16.mxu0 %v1061_v48  ;;  %v1018_v51 = vpop.permute.xlu0 %1017 }
 0x153   : > { %v1067_v62 = vsel %vm1055_vm7, %v1016_v18, %v1018_v51  ;;  %v1066_v2 = vsel %vm1055_vm7, %v1014_v50, %v1016_v18  ;;  %v3001_v18 = vld [vmem:[%s4598_s1 + $0xa0] ss:$8 sps:$4 sm:$0xff]  }
 0x154   : > { %688 = vmatmul.mubr.bf16.gmra.mrb[4].mxu0 %v2977_v47 }
 0x155   : > { %1121 = vmatpush1.bf16.msra.mxu0 %v1060_v52  ;;  %2841 = vmatprep.mubr.msk.bf16.mxu0 %vm632_vm6, %v2981_v49 }
 0x156   : > { %v1024_v54 = vpop.permute.xlu1 %1023  ;;  %1122 = vmatprep.subr.bf16.mxu0 %v1063_v53  ;;  %v1022_v55 = vpop.permute.xlu0 %1021  ;;  %v719_v53 = vlaneseq }
 0x157   : > { %v1069_v5 = vsel %vm1055_vm7, %v1022_v55, %v1024_v54 }
 0x158   : > { %v720_v54 = vshrl.u32 %v719_v53, 7 }
 0x159   : > { %1123 = vmatpush1.bf16.msra.mxu0 %v1062_v56  ;;  %v199_v56 = vld [vmem:[%s4600_s3] ss:$2 sm:$0x3] }
 0x15a   : > { %v1028_v59 = vpop.permute.xlu1 %1027  ;;  %1124 = vmatprep.subr.bf16.mxu0 %v1065_v57  ;;  %v1020_v60 = vpop.permute.xlu0 %1019 }
 0x15b   : > { %v1068_v11 = vsel %vm1055_vm7, %v1020_v60, %v1022_v55  ;;  %v721_v55 = vsub.s32 0, %v720_v54 }
 0x15c   : > { %698 = vmatmul.mubr.bf16.gmra.mrb[8].mxu0 %v2983_v40  ;;  %v725_v40 = vsub.s32 1, %v720_v54 }
 0x15d   : > { %1125 = vmatpush1.bf16.msra.mxu0 %v1064_v61  ;;  %2842 = vmatprep.mubr.msk.bf16.mxu0 %vm632_vm6, %v2987_v58  ;;  %v3736_v57 = vrot.slane %v199_v56, %v721_v55 }
 0x15e   : > { %v1026_v63 = vpop.permute.xlu1 %1025  ;;  %1126 = vmatprep.subr.bf16.mxu0 %v1067_v62  ;;  %v1030_v1 = vpop.permute.xlu0 %1029  ;;  %v3738_v58 = vrot.slane %v199_v56, %v725_v40 }
 0x15f   : > { %v1071_v12 = vsel %vm1055_vm7, %v1028_v59, %v1030_v1  ;;  %v1070_v16 = vsel %vm1055_vm7, %v1026_v63, %v1028_v59 }
 0x161   : > { %1127 = vmatpush1.bf16.msra.mxu0 %v1066_v2 }
 0x162   : > { %v1036_v7 = vpop.permute.xlu1 %1035  ;;  %1128 = vmatprep.subr.bf16.mxu0 %v1069_v5  ;;  %v1034_v10 = vpop.permute.xlu0 %1033 }
 0x163   : > { %v1073_v19 = vsel %vm1055_vm7, %v1034_v10, %v1036_v7 }
 0x164   : > { %708 = vmatmul.mubr.bf16.gmra.mrb[12].mxu0 %v2989_v3 }
 0x165   : > { %1129 = vmatpush1.bf16.msra.mxu0 %v1068_v11  ;;  %2871 = vmatprep.mubr.msk.bf16.mxu0 %vm632_vm6, %v2995_v6 }
 0x166   : > { %v1040_v14 = vpop.permute.xlu1 %1039  ;;  %1130 = vmatprep.subr.bf16.mxu0 %v1071_v12  ;;  %v1032_v15 = vpop.permute.xlu0 %1031 }
 0x167   : > { %v1072_v23 = vsel %vm1055_vm7, %v1032_v15, %v1034_v10 }
 0x169   : > { %1131 = vmatpush1.bf16.msra.mxu0 %v1070_v16 }
 0x16a   : > { %v1038_v20 = vpop.permute.xlu1 %1037  ;;  %1132 = vmatprep.subr.bf16.mxu0 %v1073_v19  ;;  %v1042_v21 = vpop.permute.xlu0 %1041 }
 0x16b   : > { %v1075_v24 = vsel %vm1055_vm7, %v1040_v14, %v1042_v21  ;;  %v1074_v28 = vsel %vm1055_vm7, %v1038_v20, %v1040_v14 }
 0x16d   : > { %1133 = vmatpush1.bf16.msra.mxu0 %v1072_v23 }
 0x16e   : > { %v1048_v25 = vpop.permute.xlu1 %1047  ;;  %1134 = vmatprep.subr.bf16.mxu0 %v1075_v24  ;;  %v1046_v27 = vpop.permute.xlu0 %1045 }
 0x16f   : > { %v1077_v13 = vsel %vm1055_vm7, %v1046_v27, %v1048_v25 }
 0x171   : > { %1135 = vmatpush1.bf16.msra.mxu0 %v1074_v28 }
 0x172   : > { %v1052_v29 = vpop.permute.xlu1 %1051  ;;  %1136 = vmatprep.subr.bf16.mxu0 %v1077_v13  ;;  %v1044_v8 = vpop.permute.xlu0 %1043 }
 0x173   : > { %v1076_v9 = vsel %vm1055_vm7, %v1044_v8, %v1046_v27 }
 0x175   : > { %1137 = vmatpush1.bf16.msra.mxu0 %v1076_v9 }
 0x176   : > { %v1050_v30 = vpop.permute.xlu1 %1049  ;;  %v1054_v31 = vpop.permute.xlu0 %1053 }
 0x177   : > { %v1078_v4 = vsel %vm1055_vm7, %v1050_v30, %v1052_v29  ;;  %v1079_v32 = vsel %vm1055_vm7, %v1052_v29, %v1054_v31 }
 0x178   : > { %1138 = vmatprep.subr.bf16.mxu0 %v1079_v32 }
 0x179   : > { %1139 = vmatpush1.bf16.msra.mxu0 %v1078_v4 }
 0x17c   : > { %1149 = vmatmul.mubr.bf16.vlgmr.msra.gmra.mrb[16].mxu0 %v2993_v33 }
 0x17d   : > { %2872 = vmatprep.mubr.msk.bf16.mxu0 %vm632_vm6, %v2996_v34 }
 0x184   : > { %1159 = vmatmul.mubr.bf16.gmra.mrb[20].mxu0 %v2998_v17 }
 0x185   : > { %2873 = vmatprep.mubr.msk.bf16.mxu0 %vm632_vm6, %v2999_v22 }
 0x18c   : > { %1169 = vmatmul.mubr.bf16.gmra.mrb[24].mxu0 %v3001_v18 }
 0x18d   : > { %2874 = vmatprep.mubr.msk.bf16.mxu0 %vm632_vm6, %v3002_v35 }
 0x194   : > { %1179 = vmatmul.mubr.bf16.gmra.mrb[28].mxu0 %v3004_v26  ;;  %v827_v36 = vpop.f32.mrb[0].mxu1 }
 0x195   : > { %v829_v37 = vpop.f32.mrb[1].mxu1 }
 0x196   : > { %v831_v41 = vpop.f32.mrb[2].mxu1 }
 0x197   : > { %v833_v42 = vpop.f32.mrb[3].mxu1 }
 0x19c   : > { %v837_v43 = vpop.f32.mrb[4].mxu1 }
 0x19d   : > { %v839_v44 = vpop.f32.mrb[5].mxu1 }
 0x19e   : > { %v841_v45 = vpop.f32.mrb[6].mxu1 }
 0x19f   : > { %v843_v38 = vpop.f32.mrb[7].mxu1 }
 0x1b4   : > { %v847_v39 = vpop.f32.mrb[8].mxu1 }
 0x1b5   : > { %v849_v46 = vpop.f32.mrb[9].mxu1 }
 0x1b6   : > { %v851_v47 = vpop.f32.mrb[10].mxu1 }
 0x1b7   : > { %v853_v48 = vpop.f32.mrb[11].mxu1 }
 0x1c0   : > { %v857_v49 = vpop.f32.mrb[12].mxu1 }
 0x1c1   : > { %v859_v50 = vpop.f32.mrb[13].mxu1 }
 0x1c2   : > { %v861_v51 = vpop.f32.mrb[14].mxu1 }
 0x1c3   : > { %v863_v52 = vpop.f32.mrb[15].mxu1 }
 0x21f   : > { %v679_v59 = vpop.f32.mrb[0].mxu0 }
 0x220   : > { %v729_v60 = vmul.f32 %v3736_v57, %v679_v59  ;;  %v681_v61 = vpop.f32.mrb[1].mxu0 }
 0x221   : > { %v730_v62 = vmul.f32 %v3738_v58, %v681_v61  ;;  %v683_v63 = vpop.f32.mrb[2].mxu0 }
 0x222   : > { %v731_v1 = vmul.f32 %v3736_v57, %v683_v63  ;;  %v828_v2 = vadd.f32 %v827_v36, %v729_v60  ;;  %v685_v3 = vpop.f32.mrb[3].mxu0 }
 0x223   : > { %v732_v5 = vmul.f32 %v3738_v58, %v685_v3  ;;  %v830_v6 = vadd.f32 %v829_v37, %v730_v62 }
 0x224   : > { %v832_v7 = vadd.f32 %v831_v41, %v731_v1 }
 0x225   : > { %v834_v10 = vadd.f32 %v833_v42, %v732_v5 }
 0x227   : > { %v689_v11 = vpop.f32.mrb[4].mxu0 }
 0x228   : > { %v733_v12 = vmul.f32 %v3736_v57, %v689_v11  ;;  %v691_v14 = vpop.f32.mrb[5].mxu0 }
 0x229   : > { %v734_v15 = vmul.f32 %v3738_v58, %v691_v14  ;;  %v693_v16 = vpop.f32.mrb[6].mxu0 }
 0x22a   : > { %v735_v19 = vmul.f32 %v3736_v57, %v693_v16  ;;  %v838_v20 = vadd.f32 %v837_v43, %v733_v12  ;;  %v695_v21 = vpop.f32.mrb[7].mxu0 }
 0x22b   : > { %v736_v23 = vmul.f32 %v3738_v58, %v695_v21  ;;  %v840_v24 = vadd.f32 %v839_v44, %v734_v15 }
 0x22c   : > { %v842_v25 = vadd.f32 %v841_v45, %v735_v19 }
 0x22d   : > { %v844_v27 = vadd.f32 %v843_v38, %v736_v23 }
 0x22f   : > { %v699_v28 = vpop.f32.mrb[8].mxu0 }
 0x230   : > { %v737_v13 = vmul.f32 %v3736_v57, %v699_v28  ;;  %v701_v29 = vpop.f32.mrb[9].mxu0 }
 0x231   : > { %v738_v8 = vmul.f32 %v3738_v58, %v701_v29  ;;  %v703_v9 = vpop.f32.mrb[10].mxu0 }
 0x232   : > { %v739_v30 = vmul.f32 %v3736_v57, %v703_v9  ;;  %v848_v31 = vadd.f32 %v847_v39, %v737_v13  ;;  %v705_v4 = vpop.f32.mrb[11].mxu0  ;;  %v2822_v39 = vld [vmem:[%s4600_s3 + $0x1] ss:$2 sm:$0x3] }
 0x233   : > { %v740_v32 = vmul.f32 %v3738_v58, %v705_v4  ;;  %v850_v33 = vadd.f32 %v849_v46, %v738_v8  ;;  %v3763_v46 = vrot.slane %v2822_v39, %v721_v55 }
 0x234   : > { %v852_v34 = vadd.f32 %v851_v47, %v739_v30  ;;  %v3765_v47 = vrot.slane %v2822_v39, %v725_v40 }
 0x235   : > { %v854_v17 = vadd.f32 %v853_v48, %v740_v32 }
 0x237   : > { %v709_v22 = vpop.f32.mrb[12].mxu0 }
 0x238   : > { %v741_v18 = vmul.f32 %v3736_v57, %v709_v22  ;;  %v711_v35 = vpop.f32.mrb[13].mxu0 }
 0x239   : > { %v742_v26 = vmul.f32 %v3738_v58, %v711_v35  ;;  %v713_v36 = vpop.f32.mrb[14].mxu0 }
 0x23a   : > { %v743_v37 = vmul.f32 %v3736_v57, %v713_v36  ;;  %v858_v41 = vadd.f32 %v857_v49, %v741_v18  ;;  %v715_v42 = vpop.f32.mrb[15].mxu0 }
 0x23b   : > { %v744_v43 = vmul.f32 %v3738_v58, %v715_v42  ;;  %v860_v44 = vadd.f32 %v859_v50, %v742_v26 }
 0x23c   : > { %v3756_v45 = vadd.f32 %v861_v51, %v743_v37 }
 0x23d   : > { %v3758_v38 = vadd.f32 %v863_v52, %v744_v43 }
 0x24f   : > { %v1150_v48 = vpop.f32.mrb[16].mxu0 }
 0x250   : > { %v1200_v53 = vmul.f32 %v3763_v46, %v1150_v48  ;;  %v1152_v49 = vpop.f32.mrb[17].mxu0 }
 0x251   : > { %v1201_v54 = vmul.f32 %v3765_v47, %v1152_v49  ;;  %v1154_v56 = vpop.f32.mrb[18].mxu0 }
 0x252   : > { %v3769_v50 = vadd.f32 %v1200_v53, %v828_v2  ;;  %v1202_v51 = vmul.f32 %v3763_v46, %v1154_v56  ;;  %v1156_v52 = vpop.f32.mrb[19].mxu0 }
 0x253   : > { %v1217_v59 = vadd.f32 %v1201_v54, %v830_v6  ;;  %v1203_v60 = vmul.f32 %v3765_v47, %v1156_v52 }
 0x254   : > { %v1218_v61 = vadd.f32 %v1202_v51, %v832_v7 }
 0x255   : > { %v1219_v55 = vadd.f32 %v1203_v60, %v834_v10  ;;  %v1240_v40 = vadd.f32 %v1217_v59, %v3769_v50 }
 0x257   : > { %v1160_v62 = vpop.f32.mrb[20].mxu0  ;;  %1241 = vadd.xlane.f32.xlu0 %v1240_v40  ;;  %v1243_v63 = vadd.f32 %v1219_v55, %v1218_v61 }
 0x258   : > { %v1204_v1 = vmul.f32 %v3763_v46, %v1160_v62  ;;  %v1162_v3 = vpop.f32.mrb[21].mxu0 }
 0x259   : > { %v1205_v5 = vmul.f32 %v3765_v47, %v1162_v3  ;;  %v1164_v2 = vpop.f32.mrb[22].mxu0  ;;  %1244 = vadd.xlane.f32.xlu1 %v1243_v63 }
 0x25a   : > { %v1220_v11 = vadd.f32 %v1204_v1, %v838_v20  ;;  %v1206_v12 = vmul.f32 %v3763_v46, %v1164_v2  ;;  %v1166_v6 = vpop.f32.mrb[23].mxu0 }
 0x25b   : > { %v1221_v14 = vadd.f32 %v1205_v5, %v840_v24  ;;  %v1207_v7 = vmul.f32 %v3765_v47, %v1166_v6 }
 0x25c   : > { %v3778_v10 = vadd.f32 %v1206_v12, %v842_v25 }
 0x25d   : > { %v3780_v15 = vadd.f32 %v1207_v7, %v844_v27  ;;  %v1246_v16 = vadd.f32 %v1221_v14, %v1220_v11 }
 0x25f   : > { %v1170_v19 = vpop.f32.mrb[24].mxu0  ;;  %1247 = vadd.xlane.f32.xlu0 %v1246_v16  ;;  %v1249_v20 = vadd.f32 %v3780_v15, %v3778_v10 }
 0x260   : > { %v1208_v21 = vmul.f32 %v3763_v46, %v1170_v19  ;;  %v1172_v23 = vpop.f32.mrb[25].mxu0 }
 0x261   : > { %v1209_v28 = vmul.f32 %v3765_v47, %v1172_v23  ;;  %v1174_v13 = vpop.f32.mrb[26].mxu0 }
 0x262   : > { %v3786_v29 = vadd.f32 %v1208_v21, %v848_v31  ;;  %v1210_v24 = vmul.f32 %v3763_v46, %v1174_v13  ;;  %v1176_v25 = vpop.f32.mrb[27].mxu0 }
 0x263   : > { %v1225_v8 = vadd.f32 %v1209_v28, %v850_v33  ;;  %v1211_v27 = vmul.f32 %v3765_v47, %v1176_v25  ;;  %1250 = vadd.xlane.f32.xlu0 %v1249_v20 }
 0x264   : > { %v3790_v9 = vadd.f32 %v1210_v24, %v852_v34 }
 0x265   : > { %v3792_v30 = vadd.f32 %v1211_v27, %v854_v17  ;;  %v1252_v4 = vadd.f32 %v1225_v8, %v3786_v29 }
 0x267   : > { %v1180_v32 = vpop.f32.mrb[28].mxu0  ;;  %1253 = vadd.xlane.f32.xlu1 %v1252_v4  ;;  %v1255_v22 = vadd.f32 %v3792_v30, %v3790_v9 }
 0x268   : > { %v1212_v31 = vmul.f32 %v3763_v46, %v1180_v32  ;;  %v1182_v18 = vpop.f32.mrb[29].mxu0 }
 0x269   : > { %v1213_v35 = vmul.f32 %v3765_v47, %v1182_v18  ;;  %v1184_v33 = vpop.f32.mrb[30].mxu0  ;;  %1256 = vadd.xlane.f32.xlu0 %v1255_v22 }
 0x26a   : > { %v3799_v26 = vadd.f32 %v1212_v31, %v858_v41  ;;  %v1214_v34 = vmul.f32 %v3763_v46, %v1184_v33  ;;  %v1186_v17 = vpop.f32.mrb[31].mxu0  ;;  %v3086_v41 = vmov 1  }
 0x26b   : > { %v1229_v36 = vadd.f32 %v1213_v35, %v860_v44  ;;  %v1215_v37 = vmul.f32 %v3765_v47, %v1186_v17  ;;  %2955 = vset.pattern.permute.xlu1 %v3086_v41 }
 0x26c   : > { %v3804_v42 = vadd.f32 %v1214_v34, %v3756_v45 }
 0x26d   : > { %v3807_v43 = vadd.f32 %v1215_v37, %v3758_v38  ;;  %v1258_v39 = vadd.f32 %v1229_v36, %v3799_v26 }
 0x26f   : > { %1259 = vadd.xlane.f32.xlu1 %v1258_v39  ;;  %v1261_v48 = vadd.f32 %v3807_v43, %v3804_v42 }
 0x271   : > { %1262 = vadd.xlane.f32.xlu0 %v1261_v48 }
 0x2e4   : > { %v1242_v53 = vpop.xlane.xlu0 %1241 }
 0x2e5   : > { %v1264_v44 = vmul.f32 0.00390625, %v1242_v53  ;;  %v1232_v53 = vld [vmem:[%s4599_s2] sm:$0xff] }
 0x2e6   : > { %v1245_v49 = vpop.xlane.xlu1 %1244 }
 0x2e7   : > { %v3814_v54 = vsub.f32 %v3769_v50, %v1264_v44  ;;  %v3816_v45 = vsub.f32 %v1217_v59, %v1264_v44  ;;  %v1265_v38 = vmul.f32 0.00390625, %v1245_v49  ;;  %v1235_v44 = vld [vmem:[%s4599_s2 + $0x18] sm:$0xff] }
 0x2e9   : > { %v3818_v56 = vsub.f32 %v1218_v61, %v1265_v38  ;;  %v3820_v51 = vsub.f32 %v1219_v55, %v1265_v38  ;;  %v1288_v52 = vmul.f32 %v3814_v54, %v3814_v54  ;;  %v1289_v60 = vmul.f32 %v3816_v45, %v3816_v45 }
 0x2eb   : > { %v1290_v40 = vmul.f32 %v3818_v56, %v3818_v56  ;;  %v1291_v50 = vmul.f32 %v3820_v51, %v3820_v51  ;;  %v1304_v62 = vadd.f32 %v1289_v60, %v1288_v52 }
 0x2ec   : > { %v1248_v59 = vpop.xlane.xlu0 %1247 }
 0x2ed   : > { %v1266_v63 = vmul.f32 0.00390625, %v1248_v59  ;;  %1305 = vadd.xlane.f32.xlu1 %v1304_v62  ;;  %v1307_v61 = vadd.f32 %v1291_v50, %v1290_v40 }
 0x2ef   : > { %v3830_v1 = vsub.f32 %v1220_v11, %v1266_v63  ;;  %v3832_v55 = vsub.f32 %v1221_v14, %v1266_v63  ;;  %1308 = vadd.xlane.f32.xlu0 %v1307_v61 }
 0x2f0   : > { %v1251_v3 = vpop.xlane.xlu0 %1250 }
 0x2f1   : > { %v1267_v5 = vmul.f32 0.00390625, %v1251_v3  ;;  %v1292_v2 = vmul.f32 %v3830_v1, %v3830_v1  ;;  %v1293_v12 = vmul.f32 %v3832_v55, %v3832_v55 }
 0x2f3   : > { %v3839_v6 = vsub.f32 %v3778_v10, %v1267_v5  ;;  %v3842_v7 = vsub.f32 %v3780_v15, %v1267_v5  ;;  %v1310_v16 = vadd.f32 %v1293_v12, %v1292_v2 }
 0x2f4   : > { %v1254_v11 = vpop.xlane.xlu1 %1253 }
 0x2f5   : > { %v1294_v14 = vmul.f32 %v3839_v6, %v3839_v6  ;;  %v1295_v19 = vmul.f32 %v3842_v7, %v3842_v7  ;;  %v1268_v21 = vmul.f32 0.00390625, %v1254_v11  ;;  %1311 = vadd.xlane.f32.xlu1 %v1310_v16 }
 0x2f6   : > { %v1257_v23 = vpop.xlane.xlu0 %1256 }
 0x2f7   : > { %v3849_v28 = vsub.f32 %v3786_v29, %v1268_v21  ;;  %v3851_v13 = vsub.f32 %v1225_v8, %v1268_v21  ;;  %v1269_v10 = vmul.f32 0.00390625, %v1257_v23  ;;  %v1313_v20 = vadd.f32 %v1295_v19, %v1294_v14 }
 0x2f9   : > { %v1296_v15 = vmul.f32 %v3849_v28, %v3849_v28  ;;  %v1297_v24 = vmul.f32 %v3851_v13, %v3851_v13  ;;  %v3858_v25 = vsub.f32 %v3790_v9, %v1269_v10  ;;  %v3861_v27 = vsub.f32 %v3792_v30, %v1269_v10  ;;  %1314 = vadd.xlane.f32.xlu0 %v1313_v20  ;;  %v1237_v20 = vld [vmem:[%s4599_s2 + $0x28] sm:$0xff] }
 0x2fb   : > { %v1298_v29 = vmul.f32 %v3858_v25, %v3858_v25  ;;  %v1299_v8 = vmul.f32 %v3861_v27, %v3861_v27  ;;  %v1316_v4 = vadd.f32 %v1297_v24, %v1296_v15 }
 0x2fc   : > { %v1260_v32 = vpop.xlane.xlu1 %1259 }
 0x2fd   : > { %v1270_v22 = vmul.f32 0.00390625, %v1260_v32  ;;  %1317 = vadd.xlane.f32.xlu1 %v1316_v4  ;;  %v1319_v31 = vadd.f32 %v1299_v8, %v1298_v29  ;;  %v1236_v8 = vld [vmem:[%s4599_s2 + $0x20] sm:$0xff] }
 0x2fe   : > { %v1263_v18 = vpop.xlane.xlu0 %1262 }
 0x2ff   : > { %v3868_v35 = vsub.f32 %v3799_v26, %v1270_v22  ;;  %v3870_v9 = vsub.f32 %v1229_v36, %v1270_v22  ;;  %v1271_v30 = vmul.f32 0.00390625, %v1263_v18  ;;  %1320 = vadd.xlane.f32.xlu0 %v1319_v31 }
 0x301   : > { %v1300_v33 = vmul.f32 %v3868_v35, %v3868_v35  ;;  %v1301_v34 = vmul.f32 %v3870_v9, %v3870_v9  ;;  %v3877_v17 = vsub.f32 %v3804_v42, %v1271_v30  ;;  %v3880_v37 = vsub.f32 %v3807_v43, %v1271_v30  ;;  %v1233_v42 = vld [vmem:[%s4599_s2 + $0x8] sm:$0xff]  ;;  %v1234_v43 = vld [vmem:[%s4599_s2 + $0x10] sm:$0xff] }
 0x303   : > { %v1302_v26 = vmul.f32 %v3877_v17, %v3877_v17  ;;  %v1303_v36 = vmul.f32 %v3880_v37, %v3880_v37  ;;  %v1322_v39 = vadd.f32 %v1301_v34, %v1300_v33 }
 0x305   : > { %1323 = vadd.xlane.f32.xlu1 %v1322_v39  ;;  %v1325_v48 = vadd.f32 %v1303_v36, %v1302_v26 }
 0x307   : > { %1326 = vadd.xlane.f32.xlu0 %v1325_v48 }
 0x316   : > { %1418 = vperm.xlu1 %2955, %v1232_v53  }
 0x31a   : > { %1423 = vperm.xlu1 %2955, %v1233_v42  }
 0x31e   : > { %1428 = vperm.xlu1 %2955, %v1234_v43  }
 0x322   : > { %1433 = vperm.xlu1 %2955, %v1235_v44  }
 0x326   : > { %2956 = vset.pattern.permute.xlu1 %v3081_v0 }
 0x37a   : > { %v1306_v49 = vpop.xlane.xlu1 %1305 }
 0x37b   : > { %v1328_v38 = vmul.f32 0.00390625, %v1306_v49 }
 0x37c   : > { %v1309_v52 = vpop.xlane.xlu0 %1308 }
 0x37d   : > { %v1336_v60 = vadd.f32 1e-05, %v1328_v38  ;;  %v1329_v40 = vmul.f32 0.00390625, %v1309_v52 }
 0x37f   : > { %3041 = vrsqrt.f32 %v1336_v60  ;;  %v1337_v50 = vadd.f32 1e-05, %v1329_v40 }
 0x381   : > { %3043 = vrsqrt.f32 %v1337_v50 }
 0x382   : > { %v1312_v62 = vpop.xlane.xlu1 %1311 }
 0x383   : > { %v1330_v59 = vmul.f32 0.00390625, %v1312_v62 }
 0x385   : > { %v1338_v63 = vadd.f32 1e-05, %v1330_v59 }
 0x386   : > { %v1315_v61 = vpop.xlane.xlu0 %1314 }
 0x387   : > { %3045 = vrsqrt.f32 %v1338_v63  ;;  %v1331_v3 = vmul.f32 0.00390625, %v1315_v61 }
 0x389   : > { %v3042_v5 = vpop.eup %3041  ;;  %v1339_v2 = vadd.f32 1e-05, %v1331_v3 }
 0x38a   : > { %v1318_v12 = vpop.xlane.xlu1 %1317  ;;  %v1352_v16 = vmul.f32 %v3042_v5, %v1232_v53 }
 0x38b   : > { %v3044_v11 = vpop.eup %3043  ;;  %3047 = vrsqrt.f32 %v1339_v2  ;;  %v1332_v14 = vmul.f32 0.00390625, %v1318_v12 }
 0x38c   : > { %1362 = vperm.xlu1 %2956, %v1352_v16   ;;  %v1321_v19 = vpop.xlane.xlu0 %1320  ;;  %v1353_v21 = vmul.f32 %v3044_v11, %v1233_v42  ;;  %v1238_v42 = vld [vmem:[%s4599_s2 + $0x30] sm:$0xff] }
 0x38d   : > { %v1340_v23 = vadd.f32 1e-05, %v1332_v14  ;;  %v1333_v10 = vmul.f32 0.00390625, %v1321_v19 }
 0x38e   : > { %1367 = vperm.xlu0 %2957, %v1353_v21  }
 0x38f   : > { %3049 = vrsqrt.f32 %v1340_v23  ;;  %v1341_v15 = vadd.f32 1e-05, %v1333_v10 }
 0x390   : > { %2959 = vset.pattern.permute.xlu1 %v3086_v41 }
 0x391   : > { %v3046_v24 = vpop.eup %3045  ;;  %1443 = vperm.xlu1 %2959, %v1237_v20   ;;  %3051 = vrsqrt.f32 %v1341_v15 }
 0x392   : > { %v1324_v29 = vpop.xlane.xlu1 %1323  ;;  %2958 = vset.pattern.permute.xlu0 %v3086_v41  ;;  %v1354_v22 = vmul.f32 %v3046_v24, %v1234_v43  ;;  %v1239_v43 = vld [vmem:[%s4599_s2 + $0x38] sm:$0xff] }
 0x393   : > { %v1334_v4 = vmul.f32 0.00390625, %v1324_v29  ;;  %1438 = vperm.xlu0 %2958, %v1236_v8  }
 0x394   : > { %v1327_v32 = vpop.xlane.xlu0 %1326 }
 0x395   : > { %v3048_v31 = vpop.eup %3047  ;;  %v1342_v18 = vadd.f32 1e-05, %v1334_v4  ;;  %v1335_v30 = vmul.f32 0.00390625, %v1327_v32  ;;  %2960 = vset.pattern.permute.xlu1 %v3081_v0 }
 0x396   : > { %1372 = vperm.xlu1 %2960, %v1354_v22   ;;  %v1355_v34 = vmul.f32 %v3048_v31, %v1235_v44  ;;  %v1419_v38 = vpop.permute.xlu1 %1418 }
 0x397   : > { %3053 = vrsqrt.f32 %v1342_v18  ;;  %v1343_v33 = vadd.f32 1e-05, %v1335_v30  ;;  %2961 = vset.pattern.permute.xlu0 %v3081_v0 }
 0x399   : > { %v3050_v26 = vpop.eup %3049  ;;  %3055 = vrsqrt.f32 %v1343_v33 }
 0x39a   : > { %1377 = vperm.xlu1 %2960, %v1355_v34   ;;  %v1356_v36 = vmul.f32 %v3050_v26, %v1236_v8  ;;  %v1424_v52 = vpop.permute.xlu1 %1423 }
 0x39b   : > { %v3052_v39 = vpop.eup %3051 }
 0x39c   : > { %v1357_v48 = vmul.f32 %v3052_v39, %v1237_v20 }
 0x39e   : > { %1382 = vperm.xlu1 %2960, %v1356_v36   ;;  %v1429_v60 = vpop.permute.xlu1 %1428 }
 0x3a1   : > { %v3054_v53 = vpop.eup %3053 }
 0x3a2   : > { %1387 = vperm.xlu1 %2960, %v1357_v48   ;;  %v1358_v0 = vmul.f32 %v3054_v53, %v1238_v42  ;;  %v1434_v40 = vpop.permute.xlu1 %1433 }
 0x3a3   : > { %v3056_v49 = vpop.eup %3055 }
 0x3a4   : > { %v1359_v44 = vmul.f32 %v3056_v49, %v1239_v43 }
 0x3a6   : > { %1392 = vperm.xlu1 %2960, %v1358_v0   ;;  %1397 = vperm.xlu0 %2961, %v1359_v44  }
 0x3aa   : > { %2962 = vset.pattern.permute.xlu1 %v3086_v41 }
 0x3ab   : > { %1448 = vperm.xlu1 %2962, %v1238_v42  }
 0x3af   : > { %1453 = vperm.xlu1 %2962, %v1239_v43  }
 0x40b   : > { %v1363_v50 = vpop.permute.xlu1 %1362 }
 0x40c   : > { %v1400_v62 = vmul.f32 %v1363_v50, %v3814_v54  ;;  %v1401_v59 = vmul.f32 %v1363_v50, %v3816_v45 }
 0x40d   : > { %v1368_v63 = vpop.permute.xlu0 %1367 }
 0x40e   : > { %v1456_v61 = vadd.f32 %v1419_v38, %v1400_v62  ;;  %v1457_v3 = vadd.f32 %v1419_v38, %v1401_v59  ;;  %v1402_v5 = vmul.f32 %v1368_v63, %v3818_v56  ;;  %v1403_v2 = vmul.f32 %v1368_v63, %v3820_v51 }
 0x410   : > { %v1458_v12 = vadd.f32 %v1424_v52, %v1402_v5  ;;  %v1459_v41 = vadd.f32 %v1424_v52, %v1403_v2  ;;  %v1444_v16 = vpop.permute.xlu1 %1443  ;;  %v1472_v11 = vmax.f32 %v1456_v61, 0.0  ;;  %v1473_v14 = vmax.f32 %v1457_v3, 0.0 }
 0x412   : > { %v1474_v19 = vmax.f32 %v1458_v12, 0.0  ;;  %v1475_v21 = vmax.f32 %v1459_v41, 0.0  ;;  %v1690_v41 = vld [vmem:[#allocation2] sm:$0xff] }
 0x414   : > { %v3920_v23 = vpack.c.bf16 %v1475_v21, %v1473_v14  ;;  %v3922_v10 = vpack.c.bf16 %v1474_v19, %v1472_v11  ;;  %v1692_v11 = vld [vmem:[#allocation2 + $0x40] sm:$0xff] }
 0x415   : > { %v1373_v54 = vpop.permute.xlu1 %1372  ;;  %v1694_v14 = vld [vmem:[#allocation2 + $0x80] sm:$0xff] }
 0x416   : > { %v1404_v45 = vmul.f32 %v1373_v54, %v3830_v1  ;;  %v1405_v20 = vmul.f32 %v1373_v54, %v3832_v55  ;;  %1554 = vrot.lane.b32.xlu1 %v3920_v23, %s3082_s22  ;;  %1552 = vrot.lane.b32.xlu0 %v3922_v10, %s3082_s22  ;;  %v1695_v19 = vld [vmem:[#allocation2 + $0xa0] sm:$0xff] }
 0x417   : > { %v1697_v21 = vld [vmem:[#allocation2 + $0xe0] sm:$0xff] }
 0x418   : > { %v1460_v56 = vadd.f32 %v1429_v60, %v1404_v45  ;;  %v1461_v51 = vadd.f32 %v1429_v60, %v1405_v20  ;;  %v1696_v54 = vld [vmem:[#allocation2 + $0xc0] sm:$0xff] }
 0x419   : > { %v1378_v15 = vpop.permute.xlu1 %1377 }
 0x41a   : > { %v1406_v24 = vmul.f32 %v1378_v15, %v3839_v6  ;;  %v1407_v29 = vmul.f32 %v1378_v15, %v3842_v7  ;;  %1606 = vrot.lane.b32.xlu1 %v3920_v23, %s3083_s23  ;;  %1604 = vrot.lane.b32.xlu0 %v3922_v10, %s3083_s23  ;;  %v1476_v8 = vmax.f32 %v1460_v56, 0.0  ;;  %v1477_v4 = vmax.f32 %v1461_v51, 0.0  ;;  %v1439_v6 = vpop.permute.xlu0 %1438 }
 0x41c   : > { %v1462_v1 = vadd.f32 %v1434_v40, %v1406_v24  ;;  %v1463_v55 = vadd.f32 %v1434_v40, %v1407_v29 }
 0x41d   : > { %v1383_v32 = vpop.permute.xlu1 %1382 }
 0x41e   : > { %v1478_v22 = vmax.f32 %v1462_v1, 0.0  ;;  %v1479_v31 = vmax.f32 %v1463_v55, 0.0  ;;  %v1408_v18 = vmul.f32 %v1383_v32, %v3849_v28  ;;  %v1409_v30 = vmul.f32 %v1383_v32, %v3851_v13 }
 0x420   : > { %v3938_v33 = vpack.c.bf16 %v1479_v31, %v1477_v4  ;;  %v3940_v7 = vpack.c.bf16 %v1478_v22, %v1476_v8  ;;  %v1464_v34 = vadd.f32 %v1439_v6, %v1408_v18  ;;  %v1465_v36 = vadd.f32 %v1439_v6, %v1409_v30 }
 0x421   : > { %v1388_v26 = vpop.permute.xlu1 %1387 }
 0x422   : > { %v1410_v39 = vmul.f32 %v1388_v26, %v3858_v25  ;;  %v1411_v48 = vmul.f32 %v1388_v26, %v3861_v27  ;;  %1558 = vrot.lane.b32.xlu1 %v3938_v33, %s3082_s22  ;;  %1556 = vrot.lane.b32.xlu0 %v3940_v7, %s3082_s22  ;;  %v1480_v42 = vmax.f32 %v1464_v34, 0.0  ;;  %v1481_v43 = vmax.f32 %v1465_v36, 0.0 }
 0x424   : > { %v1466_v28 = vadd.f32 %v1444_v16, %v1410_v39  ;;  %v1467_v13 = vadd.f32 %v1444_v16, %v1411_v48  ;;  %v1693_v16 = vld [vmem:[#allocation2 + $0x60] sm:$0xff] }
 0x425   : > { %v1393_v53 = vpop.permute.xlu1 %1392  ;;  %v1398_v44 = vpop.permute.xlu0 %1397 }
 0x426   : > { %v1482_v49 = vmax.f32 %v1466_v28, 0.0  ;;  %v1483_v0 = vmax.f32 %v1467_v13, 0.0  ;;  %1610 = vrot.lane.b32.xlu1 %v3938_v33, %s3083_s23  ;;  %1608 = vrot.lane.b32.xlu0 %v3940_v7, %s3083_s23  ;;  %v1412_v52 = vmul.f32 %v1393_v53, %v3868_v35  ;;  %v1413_v60 = vmul.f32 %v1393_v53, %v3870_v9 }
 0x427   : > { %v1414_v40 = vmul.f32 %v1398_v44, %v3877_v17  ;;  %v1415_v50 = vmul.f32 %v1398_v44, %v3880_v37  ;;  %v1691_v37 = vld [vmem:[#allocation2 + $0x20] sm:$0xff] }
 0x428   : > { %v3952_v25 = vpack.c.bf16 %v1483_v0, %v1481_v43  ;;  %v3954_v27 = vpack.c.bf16 %v1482_v49, %v1480_v42 }
 0x42a   : > { %v1449_v38 = vpop.permute.xlu1 %1448  ;;  %1562 = vrot.lane.b32.xlu1 %v3952_v25, %s3082_s22  ;;  %1560 = vrot.lane.b32.xlu0 %v3954_v27, %s3082_s22 }
 0x42b   : > { %v1468_v62 = vadd.f32 %v1449_v38, %v1412_v52  ;;  %v1469_v59 = vadd.f32 %v1449_v38, %v1413_v60 }
 0x42d   : > { %v1484_v5 = vmax.f32 %v1468_v62, 0.0  ;;  %v1485_v2 = vmax.f32 %v1469_v59, 0.0 }
 0x42e   : > { %v1454_v63 = vpop.permute.xlu1 %1453  ;;  %1614 = vrot.lane.b32.xlu1 %v3952_v25, %s3083_s23  ;;  %1612 = vrot.lane.b32.xlu0 %v3954_v27, %s3083_s23 }
 0x42f   : > { %v1470_v61 = vadd.f32 %v1454_v63, %v1414_v40  ;;  %v1471_v3 = vadd.f32 %v1454_v63, %v1415_v50 }
 0x431   : > { %v1486_v35 = vmax.f32 %v1470_v61, 0.0  ;;  %v1487_v12 = vmax.f32 %v1471_v3, 0.0 }
 0x433   : > { %v3968_v9 = vpack.c.bf16 %v1486_v35, %v1484_v5  ;;  %v3970_v17 = vpack.c.bf16 %v1487_v12, %v1485_v2 }
 0x435   : > { %1566 = vrot.lane.b32.xlu1 %v3970_v17, %s3082_s22  ;;  %1564 = vrot.lane.b32.xlu0 %v3968_v9, %s3082_s22  ;;  %s4548_s22 = scalar_lea.vmem %s4601_s4, %s2937_s18 }
 0x439   : > { %1780 = vrot.lane.b32.xlu1 %v1691_v37, %s3084_s24  ;;  %1774 = vrot.lane.b32.xlu0 %v1690_v41, %s3084_s24 }
 0x43d   : > { %1792 = vrot.lane.b32.xlu1 %v1693_v16, %s3084_s24  ;;  %1786 = vrot.lane.b32.xlu0 %v1692_v11, %s3084_s24 }
 0x441   : > { %1802 = vrot.lane.b32.xlu1 %v3920_v23, %s3084_s24  ;;  %1800 = vrot.lane.b32.xlu0 %v3922_v10, %s3084_s24 }
 0x445   : > { %1806 = vrot.lane.b32.xlu1 %v3940_v7, %s3084_s24  ;;  %1798 = vrot.lane.b32.xlu0 %v1694_v14, %s3084_s24 }
 0x449   : > { %1804 = vrot.lane.b32.xlu1 %v1695_v19, %s3084_s24  ;;  %1808 = vrot.lane.b32.xlu0 %v3938_v33, %s3084_s24 }
 0x44d   : > { %1816 = vrot.lane.b32.xlu1 %v1697_v21, %s3084_s24  ;;  %1810 = vrot.lane.b32.xlu0 %v1696_v54, %s3084_s24  ;;  %v3007_v54 = vld [vmem:[%s4598_s1 + $0xc4] ss:$8 sps:$4 sm:$0xff]  }
 0x44e   : > { %2899 = vmatprep.mubr.msk.bf16.mxu1 %vm632_vm6, %v3007_v54 }
 0x451   : > { %1618 = vrot.lane.b32.xlu1 %v3970_v17, %s3083_s23  ;;  %1616 = vrot.lane.b32.xlu0 %v3968_v9, %s3083_s23 }
 0x455   : > { %1814 = vrot.lane.b32.xlu1 %v3952_v25, %s3084_s24  ;;  %1812 = vrot.lane.b32.xlu0 %v3954_v27, %s3084_s24 }
 0x459   : > { %1820 = vrot.lane.b32.xlu0 %v3970_v17, %s3084_s24  ;;  %1818 = vrot.lane.b32.xlu1 %v3968_v9, %s3084_s24 }
 0x488   : > { %v1555_v45 = vpop.permute.xlu1 %1554  ;;  %v1553_v20 = vpop.permute.xlu0 %1552 }
 0x489   : > { %1586 = vst.msk [vmem:[#allocation2 + $0x18] sm:$0xff] %vm228_vm0, %v1555_v45  ;;  %v4006_v56 = vsel %vm228_vm0, %v1553_v20, %v1555_v45 }
 0x48a   : > { %1584 = vst.msk [vmem:[#allocation2 + $0x8] sm:$0xff] %vm319_vm4, %v1553_v20  ;;  %2043 = vmatprep.subr.bf16.mxu0 %v4006_v56  ;;  %v3008_v20 = vld [vmem:[%s4598_s1 + $0x100] ss:$8 sps:$4 sm:$0xff]  }
 0x48c   : > { %v1607_v51 = vpop.permute.xlu1 %1606  ;;  %v1605_v15 = vpop.permute.xlu0 %1604 }
 0x48d   : > { %1638 = vst.msk [vmem:[#allocation2 + $0x110] sm:$0xff] %vm356_vm5, %v1607_v51  ;;  %v4012_v24 = vsel %vm356_vm5, %v1605_v15, %v1607_v51 }
 0x48e   : > { %1636 = vst.msk [vmem:[#allocation2 + $0x100] sm:$0xff] %vm252_vm1, %v1605_v15  ;;  %v2139_v15 = vld [vmem:[#allocation2 + $0x98] sm:$0xff] }
 0x490   : > { %v2127_v19 = vld [vmem:[#allocation2 + $0x18] sm:$0xff] }
 0x491   : > { %v4015_v29 = vld [vmem:[#allocation2 + $0x8] sm:$0xff] }
 0x492   : > { %1776 = vrot.lane.b32.xlu0 %v4015_v29, %s3084_s24  ;;  %2044 = vmatpush1.bf16.msra.mxu0 %v4015_v29 }
 0x494   : > { %v1559_v1 = vpop.permute.xlu1 %1558  ;;  %v1557_v55 = vpop.permute.xlu0 %1556  ;;  %v4020_v8 = vld [vmem:[#allocation2 + $0x110] sm:$0xff] }
 0x495   : > { %v1698_v4 = vld [vmem:[#allocation2 + $0x100] sm:$0xff]  ;;  %1589 = vst.msk [vmem:[#allocation2 + $0x38] sm:$0xff] %vm228_vm0, %v1559_v1  ;;  %v4024_v32 = vsel %vm228_vm0, %v1557_v55, %v1559_v1  ;;  %1826 = vrot.lane.b32.xlu1 %v4020_v8, %s3084_s24  ;;  %v3014_v1 = vld [vmem:[%s4598_s1 + $0x114] ss:$8 sps:$4 sm:$0xff]  }
 0x496   : > { %1587 = vst.msk [vmem:[#allocation2 + $0x28] sm:$0xff] %vm319_vm4, %v1557_v55  ;;  %1822 = vrot.lane.b32.xlu0 %v1698_v4, %s3084_s24  ;;  %2045 = vmatprep.subr.bf16.mxu0 %v4024_v32 }
 0x498   : > { %v1611_v22 = vpop.permute.xlu1 %1610  ;;  %v1609_v31 = vpop.permute.xlu0 %1608 }
 0x499   : > { %1641 = vst.msk [vmem:[#allocation2 + $0x130] sm:$0xff] %vm356_vm5, %v1611_v22  ;;  %v4033_v18 = vsel %vm356_vm5, %v1609_v31, %v1611_v22  ;;  %1778 = vrot.lane.b32.xlu1 %v4006_v56, %s3084_s24 }
 0x49a   : > { %1639 = vst.msk [vmem:[#allocation2 + $0x120] sm:$0xff] %vm252_vm1, %v1609_v31  ;;  %1824 = vrot.lane.b32.xlu0 %v4012_v24, %s3084_s24  ;;  %v3026_v31 = vld [vmem:[%s4598_s1 + $0x134] ss:$8 sps:$4 sm:$0xff]  }
 0x49c   : > { %v1563_v30 = vpop.permute.xlu1 %1562  ;;  %v1561_v6 = vpop.permute.xlu0 %1560  ;;  %v2130_v21 = vld [vmem:[#allocation2 + $0x38] sm:$0xff] }
 0x49d   : > { %v4040_v34 = vld [vmem:[#allocation2 + $0x28] sm:$0xff]  ;;  %1592 = vst.msk [vmem:[#allocation2 + $0x58] sm:$0xff] %vm228_vm0, %v1563_v30  ;;  %v4044_v26 = vsel %vm228_vm0, %v1561_v6, %v1563_v30  ;;  %v2154_v30 = vld [vmem:[#allocation2 + $0x138] sm:$0xff] }
 0x49e   : > { %1590 = vst.msk [vmem:[#allocation2 + $0x48] sm:$0xff] %vm319_vm4, %v1561_v6  ;;  %1782 = vrot.lane.b32.xlu1 %v4040_v34, %s3084_s24  ;;  %2046 = vmatpush1.bf16.msra.mxu0 %v4040_v34 }
 0x49f   : > { %2047 = vmatprep.subr.bf16.mxu0 %v4044_v26 }
 0x4a0   : > { %v1615_v36 = vpop.permute.xlu1 %1614  ;;  %v1613_v39 = vpop.permute.xlu0 %1612  ;;  %v4051_v48 = vld [vmem:[#allocation2 + $0x130] sm:$0xff] }
 0x4a1   : > { %v1699_v28 = vld [vmem:[#allocation2 + $0x120] sm:$0xff]  ;;  %1644 = vst.msk [vmem:[#allocation2 + $0x150] sm:$0xff] %vm356_vm5, %v1615_v36  ;;  %v4055_v13 = vsel %vm356_vm5, %v1613_v39, %v1615_v36  ;;  %1832 = vrot.lane.b32.xlu0 %v4051_v48, %s3084_s24  ;;  %v2157_v36 = vld [vmem:[#allocation2 + $0x158] sm:$0xff] }
 0x4a2   : > { %1642 = vst.msk [vmem:[#allocation2 + $0x140] sm:$0xff] %vm252_vm1, %v1613_v39  ;;  %1828 = vrot.lane.b32.xlu1 %v1699_v28, %s3084_s24 }
 0x4a4   : > { %v2133_v45 = vld [vmem:[#allocation2 + $0x58] sm:$0xff] }
 0x4a5   : > { %v4061_v53 = vld [vmem:[#allocation2 + $0x48] sm:$0xff]  ;;  %1784 = vrot.lane.b32.xlu0 %v4024_v32, %s3084_s24 }
 0x4a6   : > { %1830 = vrot.lane.b32.xlu1 %v4033_v18, %s3084_s24  ;;  %2048 = vmatpush1.bf16.msra.mxu0 %v4061_v53 }
 0x4a7   : > { %v1567_v42 = vpop.permute.xlu1 %1566  ;;  %v1565_v43 = vpop.permute.xlu0 %1564 }
 0x4a8   : > { %1595 = vst.msk [vmem:[#allocation2 + $0x78] sm:$0xff] %vm228_vm0, %v1567_v42  ;;  %v4070_v49 = vsel %vm228_vm0, %v1565_v43, %v1567_v42  ;;  %v4096_v62 = vld [vmem:[#allocation2 + $0x150] sm:$0xff] }
 0x4a9   : > { %1593 = vst.msk [vmem:[#allocation2 + $0x68] sm:$0xff] %vm319_vm4, %v1565_v43  ;;  %1788 = vrot.lane.b32.xlu0 %v4061_v53, %s3084_s24  ;;  %2049 = vmatprep.subr.bf16.mxu0 %v4070_v49  ;;  %v1700_v59 = vld [vmem:[#allocation2 + $0x140] sm:$0xff] }
 0x4aa   : > { %1790 = vrot.lane.b32.xlu1 %v4044_v26, %s3084_s24 }
 0x4ab   : > { %v4078_v0 = vpop.permute.xlu1 %1780  ;;  %v4080_v44 = vpop.permute.xlu0 %1774 }
 0x4ad   : > { %1836 = vrot.lane.b32.xlu0 %v4055_v13, %s3084_s24 }
 0x4af   : > { %v4084_v38 = vpop.permute.xlu1 %1792  ;;  %v4086_v52 = vpop.permute.xlu0 %1786  ;;  %v2136_v51 = vld [vmem:[#allocation2 + $0x78] sm:$0xff] }
 0x4b0   : > { %v1663_v60 = vld [vmem:[#allocation2 + $0x68] sm:$0xff] }
 0x4b1   : > { %1794 = vrot.lane.b32.xlu1 %v1663_v60, %s3084_s24  ;;  %2050 = vmatpush1.bf16.msra.mxu0 %v1663_v60 }
 0x4b2   : > { %1796 = vrot.lane.b32.xlu0 %v4070_v49, %s3084_s24  ;;  %2051 = vmatprep.subr.bf16.mxu0 %v3920_v23 }
 0x4b3   : > { %v4092_v40 = vpop.permute.xlu1 %1802  ;;  %v4094_v50 = vpop.permute.xlu0 %1800 }
 0x4b5   : > { %1838 = vrot.lane.b32.xlu1 %v4096_v62, %s3084_s24  ;;  %2052 = vmatpush1.bf16.msra.mxu0 %v3922_v10 }
 0x4b6   : > { %1834 = vrot.lane.b32.xlu0 %v1700_v59, %s3084_s24  ;;  %2053 = vmatprep.subr.bf16.mxu0 %v3938_v33 }
 0x4b7   : > { %v4103_v63 = vpop.permute.xlu1 %1806  ;;  %v1799_v61 = vpop.permute.xlu0 %1798 }
 0x4b8   : > { %v4107_v3 = vsel %vm254_vm3, %v1799_v61, %v4094_v50 }
 0x4b9   : > { %2054 = vmatpush1.bf16.msra.mxu0 %v3940_v7 }
 0x4ba   : > { %2055 = vmatprep.subr.bf16.mxu0 %v3952_v25 }
 0x4bb   : > { %v4111_v5 = vpop.permute.xlu1 %1804  ;;  %v4113_v2 = vpop.permute.xlu0 %1808 }
 0x4bd   : > { %2056 = vmatpush1.bf16.msra.mxu0 %v3954_v27 }
 0x4be   : > { %2057 = vmatprep.subr.bf16.mxu0 %v3970_v17 }
 0x4bf   : > { %v4117_v35 = vpop.permute.xlu1 %1816  ;;  %v4119_v12 = vpop.permute.xlu0 %1810 }
 0x4c1   : > { %2058 = vmatpush1.bf16.msra.mxu0 %v3968_v9 }
 0x4c2   : > { %2059 = vmatprep.subr.bf16.mxu0 %v4020_v8 }
 0x4c3   : > { %v1619_v37 = vpop.permute.xlu1 %1618  ;;  %v1617_v41 = vpop.permute.xlu0 %1616 }
 0x4c4   : > { %1647 = vst.msk [vmem:[#allocation2 + $0x170] sm:$0xff] %vm356_vm5, %v1619_v37  ;;  %v4125_v16 = vsel %vm356_vm5, %v1617_v41, %v1619_v37 }
 0x4c5   : > { %1645 = vst.msk [vmem:[#allocation2 + $0x160] sm:$0xff] %vm252_vm1, %v1617_v41  ;;  %2060 = vmatpush1.bf16.msra.mxu0 %v4012_v24 }
 0x4c6   : > { %2061 = vmatprep.subr.bf16.mxu0 %v4051_v48 }
 0x4c7   : > { %v4202_v55 = vpop.permute.xlu1 %1814 }
 0x4c9   : > { %2062 = vmatpush1.bf16.msra.mxu0 %v4033_v18 }
 0x4ca   : > { %2063 = vmatprep.subr.bf16.mxu0 %v4096_v62 }
 0x4cb   : > { %v4132_v11 = vld [vmem:[#allocation2 + $0x170] sm:$0xff]  ;;  %v4214_v22 = vpop.permute.xlu1 %1818 }
 0x4cc   : > { %v1701_v14 = vld [vmem:[#allocation2 + $0x160] sm:$0xff]  ;;  %1844 = vrot.lane.b32.xlu0 %v4132_v11, %s3084_s24 }
 0x4cd   : > { %1840 = vrot.lane.b32.xlu1 %v1701_v14, %s3084_s24  ;;  %2064 = vmatpush1.bf16.msra.mxu0 %v4055_v13  ;;  %v1856_v14 = vsel %vm254_vm3, %v4111_v5, %v4103_v63 }
 0x4ce   : > { %2065 = vmatprep.subr.bf16.mxu0 %v4132_v11 }
 0x4d0   : > { %2235 = vrot.lane.b32.xlu0 %v4006_v56, %s3085_s25  ;;  %v3010_v56 = vld [vmem:[%s4598_s1 + $0x104] ss:$8 sps:$4 sm:$0xff]  }
 0x4d1   : > { %2237 = vrot.lane.b32.xlu1 %v2127_v19, %s3085_s25  ;;  %2066 = vmatpush1.bf16.msra.mxu0 %v4125_v16 }
 0x4d2   : > { %2911 = vmatprep.mubr.msk.bf16.mxu0 %vm632_vm6, %v3010_v56 }
 0x4d4   : > { %2233 = vrot.lane.b32.xlu0 %v4015_v29, %s3085_s25  ;;  %2076 = vmatmul.mubr.bf16.vlgmr.msra.gmra.mrb[32].mxu0 %v3008_v20  ;;  %v2142_v29 = vld [vmem:[#allocation2 + $0xb8] sm:$0xff] }
 0x4d5   : > { %2241 = vrot.lane.b32.xlu1 %v4024_v32, %s3085_s25  ;;  %2912 = vmatprep.mubr.msk.bf16.mxu0 %vm632_vm6, %v3014_v1  ;;  %v2151_v32 = vld [vmem:[#allocation2 + $0x118] sm:$0xff] }
 0x4d8   : > { %2243 = vrot.lane.b32.xlu0 %v2130_v21, %s3085_s25 }
 0x4d9   : > { %2239 = vrot.lane.b32.xlu1 %v4040_v34, %s3085_s25 }
 0x4dc   : > { %2247 = vrot.lane.b32.xlu0 %v4044_v26, %s3085_s25 }
 0x4dd   : > { %2249 = vrot.lane.b32.xlu1 %v2133_v45, %s3085_s25 }
 0x4e0   : > { %2245 = vrot.lane.b32.xlu0 %v4061_v53, %s3085_s25 }
 0x4e1   : > { %2251 = vrot.lane.b32.xlu1 %v1663_v60, %s3085_s25 }
 0x4e4   : > { %2255 = vrot.lane.b32.xlu0 %v2136_v51, %s3085_s25 }
 0x4e5   : > { %1842 = vrot.lane.b32.xlu1 %v4125_v16, %s3084_s24 }
 0x4e8   : > { %2259 = vrot.lane.b32.xlu0 %v3920_v23, %s3085_s25  ;;  %v2145_v23 = vld [vmem:[#allocation2 + $0xd8] sm:$0xff] }
 0x4e9   : > { %2261 = vrot.lane.b32.xlu1 %v2139_v15, %s3085_s25 }
 0x4ec   : > { %2257 = vrot.lane.b32.xlu0 %v3922_v10, %s3085_s25  ;;  %v3016_v10 = vld [vmem:[%s4598_s1 + $0x110] ss:$8 sps:$4 sm:$0xff]  }
 0x4ed   : > { %2265 = vrot.lane.b32.xlu1 %v3938_v33, %s3085_s25  ;;  %2086 = vmatmul.mubr.bf16.gmra.mrb[36].mxu0 %v3016_v10  ;;  %v4194_v33 = vpop.permute.xlu0 %1812 }
 0x4f0   : > { %2267 = vrot.lane.b32.xlu0 %v2142_v29, %s3085_s25 }
 0x4f1   : > { %2263 = vrot.lane.b32.xlu1 %v3940_v7, %s3085_s25  ;;  %v2148_v7 = vld [vmem:[#allocation2 + $0xf8] sm:$0xff]  ;;  %v4208_v4 = vpop.permute.xlu0 %1820 }
 0x4f4   : > { %2271 = vrot.lane.b32.xlu0 %v3952_v25, %s3085_s25  ;;  %v3020_v25 = vld [vmem:[%s4598_s1 + $0x124] ss:$8 sps:$4 sm:$0xff]  }
 0x4f5   : > { %2253 = vrot.lane.b32.xlu1 %v4070_v49, %s3085_s25  ;;  %2913 = vmatprep.mubr.msk.bf16.mxu0 %vm632_vm6, %v3020_v25 }
 0x4f8   : > { %2269 = vrot.lane.b32.xlu0 %v3954_v27, %s3085_s25  ;;  %v3022_v27 = vld [vmem:[%s4598_s1 + $0x120] ss:$8 sps:$4 sm:$0xff]  }
 0x4f9   : > { %2273 = vrot.lane.b32.xlu1 %v2145_v23, %s3085_s25  ;;  %2096 = vmatmul.mubr.bf16.gmra.mrb[40].mxu0 %v3022_v27 }
 0x4fa   : > { %2914 = vmatprep.mubr.msk.bf16.mxu0 %vm632_vm6, %v3026_v31  ;;  %v3011_v31 = vld [vmem:[%s4598_s1 + $0xd4] ss:$8 sps:$4 sm:$0xff]  }
 0x4fc   : > { %2279 = vrot.lane.b32.xlu0 %v2148_v7, %s3085_s25 }
 0x4fd   : > { %2277 = vrot.lane.b32.xlu1 %v3970_v17, %s3085_s25 }
 0x500   : > { %2283 = vrot.lane.b32.xlu0 %v4020_v8, %s3085_s25  ;;  %v3028_v8 = vld [vmem:[%s4598_s1 + $0x130] ss:$8 sps:$4 sm:$0xff]  }
 0x501   : > { %2275 = vrot.lane.b32.xlu1 %v3968_v9, %s3085_s25  ;;  %2106 = vmatmul.mubr.bf16.gmra.mrb[44].mxu0 %v3028_v8 }
 0x504   : > { %v1777_v17 = vpop.permute.xlu0 %1776  ;;  %2281 = vrot.lane.b32.xlu0 %v4012_v24, %s3085_s25 }
 0x505   : > { %2285 = vrot.lane.b32.xlu1 %v2151_v32, %s3085_s25  ;;  %v1846_v26 = vsel %vm254_vm3, %v4080_v44, %v1777_v17 }
 0x507   : > { %v1827_v9 = vpop.permute.xlu1 %1826 }
 0x508   : > { %2291 = vrot.lane.b32.xlu0 %v2154_v30, %s3085_s25  ;;  %v1823_v24 = vpop.permute.xlu0 %1822 }
 0x509   : > { %2289 = vrot.lane.b32.xlu1 %v4051_v48, %s3085_s25  ;;  %v2160_v48 = vld [vmem:[#allocation2 + $0x178] sm:$0xff] }
 0x50b   : > { %v1779_v6 = vpop.permute.xlu1 %1778 }
 0x50c   : > { %2295 = vrot.lane.b32.xlu0 %v4096_v62, %s3085_s25  ;;  %v1847_v34 = vsel %vm254_vm3, %v1777_v17, %v1779_v6  ;;  %v1825_v39 = vpop.permute.xlu0 %1824 }
 0x50d   : > { %2287 = vrot.lane.b32.xlu1 %v4033_v18, %s3085_s25  ;;  %1906 = vmatprep.subr.bf16.mxu1 %v1847_v34  ;;  %v1862_v5 = vsel %vm254_vm3, %v1823_v24, %v1825_v39 }
 0x50e   : > { %1907 = vmatpush1.bf16.msra.mxu1 %v1846_v26 }
 0x510   : > { %v1783_v28 = vpop.permute.xlu1 %1782  ;;  %2293 = vrot.lane.b32.xlu0 %v4055_v13, %s3085_s25 }
 0x511   : > { %2297 = vrot.lane.b32.xlu1 %v2157_v36, %s3085_s25  ;;  %v1848_v13 = vsel %vm254_vm3, %v4078_v0, %v1783_v28  ;;  %v1855_v0 = vsel %vm254_vm3, %v4094_v50, %v4092_v40  ;;  %v1858_v40 = vsel %vm254_vm3, %v4119_v12, %v4194_v33  ;;  %v1861_v50 = vsel %vm254_vm3, %v4214_v22, %v4208_v4  ;;  %v3013_v36 = vld [vmem:[%s4598_s1 + $0xd0] ss:$8 sps:$4 sm:$0xff]  }
 0x513   : > { %v1833_v42 = vpop.permute.xlu0 %1832 }
 0x514   : > { %v1829_v53 = vpop.permute.xlu1 %1828  ;;  %2303 = vrot.lane.b32.xlu0 %v2160_v48, %s3085_s25 }
 0x515   : > { %2301 = vrot.lane.b32.xlu1 %v4132_v11, %s3085_s25 }
 0x517   : > { %v1785_v43 = vpop.permute.xlu0 %1784 }
 0x518   : > { %v1831_v18 = vpop.permute.xlu1 %1830  ;;  %v1849_v49 = vsel %vm254_vm3, %v1783_v28, %v1785_v43  ;;  %v3017_v28 = vld [vmem:[%s4598_s1 + $0xe4] ss:$8 sps:$4 sm:$0xff]  }
 0x519   : > { %2299 = vrot.lane.b32.xlu1 %v4125_v16, %s3085_s25  ;;  %1908 = vmatprep.subr.bf16.mxu1 %v1849_v49  ;;  %v1865_v12 = vsel %vm254_vm3, %v1831_v18, %v1833_v42  ;;  %v1864_v21 = vsel %vm254_vm3, %v1829_v53, %v1831_v18 }
 0x51a   : > { %1909 = vmatpush1.bf16.msra.mxu1 %v1848_v13 }
 0x51b   : > { %v1789_v60 = vpop.permute.xlu0 %1788 }
 0x51c   : > { %v1791_v44 = vpop.permute.xlu1 %1790  ;;  %v1850_v62 = vsel %vm254_vm3, %v4086_v52, %v1789_v60  ;;  %v1857_v52 = vsel %vm254_vm3, %v4103_v63, %v4113_v2  ;;  %v1860_v63 = vsel %vm254_vm3, %v4117_v35, %v4214_v22  ;;  %v3005_v22 = vld [vmem:[%s4598_s1 + $0xc0] ss:$8 sps:$4 sm:$0xff]  }
 0x51d   : > { %v1851_v59 = vsel %vm254_vm3, %v1789_v60, %v1791_v44  ;;  %v3019_v44 = vld [vmem:[%s4598_s1 + $0xe0] ss:$8 sps:$4 sm:$0xff]  }
 0x51e   : > { %1910 = vmatprep.subr.bf16.mxu1 %v1851_v59 }
 0x51f   : > { %1911 = vmatpush1.bf16.msra.mxu1 %v1850_v62  ;;  %v1837_v61 = vpop.permute.xlu0 %1836  ;;  %v3023_v62 = vld [vmem:[%s4598_s1 + $0xf4] ss:$8 sps:$4 sm:$0xff]  }
 0x523   : > { %v1795_v37 = vpop.permute.xlu1 %1794 }
 0x524   : > { %v1797_v41 = vpop.permute.xlu0 %1796  ;;  %v1852_v11 = vsel %vm254_vm3, %v4084_v38, %v1795_v37  ;;  %v1859_v38 = vsel %vm254_vm3, %v4194_v33, %v4202_v55 }
 0x525   : > { %v1853_v16 = vsel %vm254_vm3, %v1795_v37, %v1797_v41 }
 0x526   : > { %1912 = vmatprep.subr.bf16.mxu1 %v1853_v16 }
 0x527   : > { %1913 = vmatpush1.bf16.msra.mxu1 %v1852_v11  ;;  %v1839_v2 = vpop.permute.xlu1 %1838 }
 0x528   : > { %1914 = vmatprep.subr.bf16.mxu1 %v1855_v0  ;;  %v1835_v19 = vpop.permute.xlu0 %1834  ;;  %v1867_v20 = vsel %vm254_vm3, %v1837_v61, %v1839_v2 }
 0x529   : > { %v1866_v35 = vsel %vm254_vm3, %v1835_v19, %v1837_v61 }
 0x52b   : > { %1915 = vmatpush1.bf16.msra.mxu1 %v4107_v3  ;;  %v1863_v3 = vsel %vm254_vm3, %v1825_v39, %v1827_v9 }
 0x52c   : > { %1916 = vmatprep.subr.bf16.mxu1 %v1857_v52  ;;  %v3025_v52 = vld [vmem:[%s4598_s1 + $0xf0] ss:$8 sps:$4 sm:$0xff]  }
 0x52f   : > { %1917 = vmatpush1.bf16.msra.mxu1 %v1856_v14 }
 0x530   : > { %1918 = vmatprep.subr.bf16.mxu1 %v1859_v38  ;;  %v3031_v38 = vld [vmem:[%s4598_s1 + $0x144] ss:$8 sps:$4 sm:$0xff]  }
 0x533   : > { %1919 = vmatpush1.bf16.msra.mxu1 %v1858_v40 }
 0x534   : > { %1920 = vmatprep.subr.bf16.mxu1 %v1861_v50 }
 0x537   : > { %1921 = vmatpush1.bf16.msra.mxu1 %v1860_v63 }
 0x538   : > { %1922 = vmatprep.subr.bf16.mxu1 %v1863_v3 }
 0x53b   : > { %1923 = vmatpush1.bf16.msra.mxu1 %v1862_v5 }
 0x53c   : > { %1924 = vmatprep.subr.bf16.mxu1 %v1865_v12 }
 0x53e   : > { %v1845_v45 = vpop.permute.xlu0 %1844 }
 0x53f   : > { %v1841_v54 = vpop.permute.xlu1 %1840  ;;  %1925 = vmatpush1.bf16.msra.mxu1 %v1864_v21 }
 0x540   : > { %1926 = vmatprep.subr.bf16.mxu1 %v1867_v20 }
 0x542   : > { %v2236_v51 = vpop.permute.xlu0 %2235 }
 0x543   : > { %v2238_v56 = vpop.permute.xlu1 %2237  ;;  %1927 = vmatpush1.bf16.msra.mxu1 %v1866_v35 }
 0x544   : > { %v2306_v17 = vsel %vm1055_vm7, %v2236_v51, %v2238_v56 }
 0x546   : > { %v2234_v29 = vpop.permute.xlu0 %2233 }
 0x547   : > { %v2242_v15 = vpop.permute.xlu1 %2241  ;;  %v2305_v9 = vsel %vm1055_vm7, %v2234_v29, %v2236_v51 }
 0x54a   : > { %v2244_v23 = vpop.permute.xlu0 %2243 }
 0x54b   : > { %v2240_v1 = vpop.permute.xlu1 %2239  ;;  %v2308_v24 = vsel %vm1055_vm7, %v2242_v15, %v2244_v23 }
 0x54c   : > { %v2307_v26 = vsel %vm1055_vm7, %v2240_v1, %v2242_v15 }
 0x54e   : > { %v2248_v33 = vpop.permute.xlu0 %2247 }
 0x54f   : > { %v2250_v10 = vpop.permute.xlu1 %2249 }
 0x550   : > { %v2310_v39 = vsel %vm1055_vm7, %v2248_v33, %v2250_v10 }
 0x552   : > { %v2246_v25 = vpop.permute.xlu0 %2245 }
 0x553   : > { %v2252_v7 = vpop.permute.xlu1 %2251  ;;  %v2309_v42 = vsel %vm1055_vm7, %v2246_v25, %v2248_v33 }
 0x556   : > { %v2256_v27 = vpop.permute.xlu0 %2255 }
 0x557   : > { %v1843_v55 = vpop.permute.xlu1 %1842 }
 0x558   : > { %v1868_v4 = vsel %vm254_vm3, %v1841_v54, %v1843_v55  ;;  %v1869_v32 = vsel %vm254_vm3, %v1843_v55, %v1845_v45 }
 0x559   : > { %1928 = vmatprep.subr.bf16.mxu1 %v1869_v32  ;;  %v3034_v32 = vld [vmem:[%s4598_s1 + $0x150] ss:$8 sps:$4 sm:$0xff]  }
 0x55a   : > { %1929 = vmatpush1.bf16.msra.mxu1 %v1868_v4  ;;  %v2260_v8 = vpop.permute.xlu0 %2259  ;;  %v3032_v4 = vld [vmem:[%s4598_s1 + $0x154] ss:$8 sps:$4 sm:$0xff]  }
 0x55b   : > { %v2262_v30 = vpop.permute.xlu1 %2261  ;;  %2365 = vmatprep.subr.bf16.mxu1 %v2306_v17  ;;  %v3037_v17 = vld [vmem:[%s4598_s1 + $0x160] ss:$8 sps:$4 sm:$0xff]  }
 0x55c   : > { %v2314_v60 = vsel %vm1055_vm7, %v2260_v8, %v2262_v30  ;;  %v3040_v30 = vld [vmem:[%s4598_s1 + $0x170] ss:$8 sps:$4 sm:$0xff]  }
 0x55d   : > { %1939 = vmatmul.mubr.bf16.vlgmr.msra.gmra.mrb[16].mxu1 %v3005_v22  ;;  %v3035_v22 = vld [vmem:[%s4598_s1 + $0x164] ss:$8 sps:$4 sm:$0xff]  }
 0x55e   : > { %2366 = vmatpush1.bf16.msra.mxu1 %v2305_v9  ;;  %2900 = vmatprep.mubr.msk.bf16.mxu1 %vm632_vm6, %v3011_v31  ;;  %v2258_v34 = vpop.permute.xlu0 %2257  ;;  %v3038_v31 = vld [vmem:[%s4598_s1 + $0x174] ss:$8 sps:$4 sm:$0xff]  }
 0x55f   : > { %v2266_v6 = vpop.permute.xlu1 %2265  ;;  %2367 = vmatprep.subr.bf16.mxu1 %v2308_v24  ;;  %v2313_v37 = vsel %vm1055_vm7, %v2258_v34, %v2260_v8 }
 0x562   : > { %2368 = vmatpush1.bf16.msra.mxu1 %v2307_v26  ;;  %v2268_v53 = vpop.permute.xlu0 %2267 }
 0x563   : > { %v2264_v48 = vpop.permute.xlu1 %2263  ;;  %2369 = vmatprep.subr.bf16.mxu1 %v2310_v39  ;;  %v2316_v41 = vsel %vm1055_vm7, %v2266_v6, %v2268_v53 }
 0x564   : > { %v2315_v0 = vsel %vm1055_vm7, %v2264_v48, %v2266_v6 }
 0x565   : > { %1949 = vmatmul.mubr.bf16.gmra.mrb[20].mxu1 %v3013_v36 }
 0x566   : > { %2370 = vmatpush1.bf16.msra.mxu1 %v2309_v42  ;;  %2901 = vmatprep.mubr.msk.bf16.mxu1 %vm632_vm6, %v3017_v28  ;;  %v2272_v43 = vpop.permute.xlu0 %2271 }
 0x567   : > { %v2254_v18 = vpop.permute.xlu1 %2253 }
 0x568   : > { %v2311_v49 = vsel %vm1055_vm7, %v2252_v7, %v2254_v18  ;;  %v2312_v13 = vsel %vm1055_vm7, %v2254_v18, %v2256_v27  ;;  %v3029_v27 = vld [vmem:[%s4598_s1 + $0x140] ss:$8 sps:$4 sm:$0xff]  }
 0x569   : > { %2371 = vmatprep.subr.bf16.mxu1 %v2312_v13 }
 0x56a   : > { %2372 = vmatpush1.bf16.msra.mxu1 %v2311_v49  ;;  %v2270_v61 = vpop.permute.xlu0 %2269 }
 0x56b   : > { %v2274_v59 = vpop.permute.xlu1 %2273  ;;  %2373 = vmatprep.subr.bf16.mxu1 %v2314_v60  ;;  %v2317_v63 = vsel %vm1055_vm7, %v2270_v61, %v2272_v43 }
 0x56c   : > { %v2318_v14 = vsel %vm1055_vm7, %v2272_v43, %v2274_v59 }
 0x56d   : > { %1959 = vmatmul.mubr.bf16.gmra.mrb[24].mxu1 %v3019_v44 }
 0x56e   : > { %2374 = vmatpush1.bf16.msra.mxu1 %v2313_v37  ;;  %2902 = vmatprep.mubr.msk.bf16.mxu1 %vm632_vm6, %v3023_v62  ;;  %v2280_v11 = vpop.permute.xlu0 %2279 }
 0x56f   : > { %v2278_v16 = vpop.permute.xlu1 %2277  ;;  %2375 = vmatprep.subr.bf16.mxu1 %v2316_v41 }
 0x570   : > { %v2320_v3 = vsel %vm1055_vm7, %v2278_v16, %v2280_v11 }
 0x572   : > { %2376 = vmatpush1.bf16.msra.mxu1 %v2315_v0  ;;  %v2284_v50 = vpop.permute.xlu0 %2283 }
 0x573   : > { %v2276_v40 = vpop.permute.xlu1 %2275  ;;  %2377 = vmatprep.subr.bf16.mxu1 %v2318_v14 }
 0x574   : > { %v2319_v19 = vsel %vm1055_vm7, %v2276_v40, %v2278_v16 }
 0x575   : > { %1969 = vmatmul.mubr.bf16.gmra.mrb[28].mxu1 %v3025_v52 }
 0x576   : > { %2378 = vmatpush1.bf16.msra.mxu1 %v2317_v63  ;;  %2931 = vmatprep.mubr.msk.bf16.mxu1 %vm632_vm6, %v3031_v38  ;;  %v2282_v2 = vpop.permute.xlu0 %2281 }
 0x577   : > { %v2286_v5 = vpop.permute.xlu1 %2285  ;;  %2379 = vmatprep.subr.bf16.mxu1 %v2320_v3  ;;  %v2321_v45 = vsel %vm1055_vm7, %v2282_v2, %v2284_v50 }
 0x578   : > { %v2322_v12 = vsel %vm1055_vm7, %v2284_v50, %v2286_v5 }
 0x57a   : > { %2380 = vmatpush1.bf16.msra.mxu1 %v2319_v19  ;;  %v2292_v54 = vpop.permute.xlu0 %2291 }
 0x57b   : > { %v2290_v21 = vpop.permute.xlu1 %2289  ;;  %2381 = vmatprep.subr.bf16.mxu1 %v2322_v12 }
 0x57c   : > { %v2324_v20 = vsel %vm1055_vm7, %v2290_v21, %v2292_v54 }
 0x57e   : > { %2382 = vmatpush1.bf16.msra.mxu1 %v2321_v45  ;;  %v2296_v56 = vpop.permute.xlu0 %2295 }
 0x57f   : > { %v2288_v35 = vpop.permute.xlu1 %2287  ;;  %2383 = vmatprep.subr.bf16.mxu1 %v2324_v20 }
 0x580   : > { %v2323_v51 = vsel %vm1055_vm7, %v2288_v35, %v2290_v21 }
 0x582   : > { %2384 = vmatpush1.bf16.msra.mxu1 %v2323_v51  ;;  %v2294_v29 = vpop.permute.xlu0 %2293 }
 0x583   : > { %v2298_v15 = vpop.permute.xlu1 %2297  ;;  %v2325_v1 = vsel %vm1055_vm7, %v2294_v29, %v2296_v56 }
 0x584   : > { %v2326_v23 = vsel %vm1055_vm7, %v2296_v56, %v2298_v15 }
 0x585   : > { %2385 = vmatprep.subr.bf16.mxu1 %v2326_v23 }
 0x586   : > { %2386 = vmatpush1.bf16.msra.mxu1 %v2325_v1  ;;  %v2304_v33 = vpop.permute.xlu0 %2303 }
 0x587   : > { %v2302_v10 = vpop.permute.xlu1 %2301 }
 0x588   : > { %v2328_v7 = vsel %vm1055_vm7, %v2302_v10, %v2304_v33 }
 0x589   : > { %2387 = vmatprep.subr.bf16.mxu1 %v2328_v7 }
 0x58b   : > { %v2300_v25 = vpop.permute.xlu1 %2299 }
 0x58c   : > { %v2327_v55 = vsel %vm1055_vm7, %v2300_v25, %v2302_v10 }
 0x58d   : > { %2388 = vmatpush1.bf16.msra.mxu1 %v2327_v55 }
 0x590   : > { %2398 = vmatmul.mubr.bf16.vlgmr.msra.gmra.mrb[32].mxu1 %v3029_v27 }
 0x591   : > { %2932 = vmatprep.mubr.msk.bf16.mxu1 %vm632_vm6, %v3032_v4 }
 0x598   : > { %2408 = vmatmul.mubr.bf16.gmra.mrb[36].mxu1 %v3034_v32 }
 0x599   : > { %2933 = vmatprep.mubr.msk.bf16.mxu1 %vm632_vm6, %v3035_v22 }
 0x5a0   : > { %2418 = vmatmul.mubr.bf16.gmra.mrb[40].mxu1 %v3037_v17 }
 0x5a1   : > { %2934 = vmatprep.mubr.msk.bf16.mxu1 %vm632_vm6, %v3038_v31 }
 0x5a7   : > { %v2077_v8 = vpop.f32.mrb[32].mxu0 }
 0x5a8   : > { %2428 = vmatmul.mubr.bf16.gmra.mrb[44].mxu1 %v3040_v30  ;;  %v2079_v9 = vpop.f32.mrb[33].mxu0 }
 0x5a9   : > { %v2081_v24 = vpop.f32.mrb[34].mxu0 }
 0x5aa   : > { %v2083_v6 = vpop.f32.mrb[35].mxu0 }
 0x5c0   : > { %v2087_v34 = vpop.f32.mrb[36].mxu0 }
 0x5c1   : > { %v2089_v26 = vpop.f32.mrb[37].mxu0 }
 0x5c2   : > { %v2091_v36 = vpop.f32.mrb[38].mxu0 }
 0x5c3   : > { %v2093_v39 = vpop.f32.mrb[39].mxu0 }
 0x5cc   : > { %v2097_v28 = vpop.f32.mrb[40].mxu0 }
 0x5cd   : > { %v2099_v48 = vpop.f32.mrb[41].mxu0 }
 0x5ce   : > { %v2101_v53 = vpop.f32.mrb[42].mxu0 }
 0x5cf   : > { %v2103_v42 = vpop.f32.mrb[43].mxu0 }
 0x5d4   : > { %v2107_v18 = vpop.f32.mrb[44].mxu0 }
 0x5d5   : > { %v2109_v43 = vpop.f32.mrb[45].mxu0 }
 0x5d6   : > { %v2111_v49 = vpop.f32.mrb[46].mxu0 }
 0x5d7   : > { %v2113_v13 = vpop.f32.mrb[47].mxu0 }
 0x630   : > { %v1940_v44 = vpop.f32.mrb[16].mxu1 }
 0x631   : > { %v1979_v60 = vmul.f32 %v1940_v44, %v3736_v57  ;;  %v1942_v62 = vpop.f32.mrb[17].mxu1 }
 0x632   : > { %v1980_v59 = vmul.f32 %v1942_v62, %v3738_v58  ;;  %v1944_v61 = vpop.f32.mrb[18].mxu1 }
 0x633   : > { %v1981_v37 = vmul.f32 %v1944_v61, %v3736_v57  ;;  %v2078_v41 = vadd.f32 %v2077_v8, %v1979_v60  ;;  %v1946_v16 = vpop.f32.mrb[19].mxu1 }
 0x634   : > { %v1982_v11 = vmul.f32 %v1946_v16, %v3738_v58  ;;  %v2080_v0 = vadd.f32 %v2079_v9, %v1980_v59 }
 0x635   : > { %v2082_v52 = vadd.f32 %v2081_v24, %v1981_v37 }
 0x636   : > { %v2084_v14 = vadd.f32 %v2083_v6, %v1982_v11 }
 0x638   : > { %v1950_v38 = vpop.f32.mrb[20].mxu1 }
 0x639   : > { %v1983_v40 = vmul.f32 %v1950_v38, %v3736_v57  ;;  %v1952_v50 = vpop.f32.mrb[21].mxu1 }
 0x63a   : > { %v1984_v63 = vmul.f32 %v1952_v50, %v3738_v58  ;;  %v1954_v3 = vpop.f32.mrb[22].mxu1 }
 0x63b   : > { %v1985_v5 = vmul.f32 %v1954_v3, %v3736_v57  ;;  %v2088_v2 = vadd.f32 %v2087_v34, %v1983_v40  ;;  %v1956_v19 = vpop.f32.mrb[23].mxu1 }
 0x63c   : > { %v1986_v12 = vmul.f32 %v1956_v19, %v3738_v58  ;;  %v2090_v21 = vadd.f32 %v2089_v26, %v1984_v63 }
 0x63d   : > { %v2092_v54 = vadd.f32 %v2091_v36, %v1985_v5 }
 0x63e   : > { %v2094_v45 = vadd.f32 %v2093_v39, %v1986_v12 }
 0x640   : > { %v1960_v20 = vpop.f32.mrb[24].mxu1 }
 0x641   : > { %v1987_v35 = vmul.f32 %v1960_v20, %v3736_v57  ;;  %v1962_v56 = vpop.f32.mrb[25].mxu1 }
 0x642   : > { %v1988_v51 = vmul.f32 %v1962_v56, %v3738_v58  ;;  %v1964_v15 = vpop.f32.mrb[26].mxu1 }
 0x643   : > { %v1989_v29 = vmul.f32 %v1964_v15, %v3736_v57  ;;  %v2098_v1 = vadd.f32 %v2097_v28, %v1987_v35  ;;  %v1966_v23 = vpop.f32.mrb[27].mxu1 }
 0x644   : > { %v1990_v10 = vmul.f32 %v1966_v23, %v3738_v58  ;;  %v2100_v33 = vadd.f32 %v2099_v48, %v1988_v51 }
 0x645   : > { %v2102_v7 = vadd.f32 %v2101_v53, %v1989_v29 }
 0x646   : > { %v2104_v25 = vadd.f32 %v2103_v42, %v1990_v10 }
 0x648   : > { %v1970_v55 = vpop.f32.mrb[28].mxu1 }
 0x649   : > { %v1991_v27 = vmul.f32 %v1970_v55, %v3736_v57  ;;  %v1972_v4 = vpop.f32.mrb[29].mxu1 }
 0x64a   : > { %v1992_v32 = vmul.f32 %v1972_v4, %v3738_v58  ;;  %v1974_v22 = vpop.f32.mrb[30].mxu1 }
 0x64b   : > { %v1993_v17 = vmul.f32 %v1974_v22, %v3736_v57  ;;  %v2108_v31 = vadd.f32 %v2107_v18, %v1991_v27  ;;  %v1976_v30 = vpop.f32.mrb[31].mxu1 }
 0x64c   : > { %v1994_v8 = vmul.f32 %v1976_v30, %v3738_v58  ;;  %v2110_v9 = vadd.f32 %v2109_v43, %v1992_v32  ;;  %v3087_v30 = vmov 3  }
 0x64d   : > { %v2112_v24 = vadd.f32 %v2111_v49, %v1993_v17  ;;  %2963 = vset.pattern.permute.xlu1 %v3087_v30  ;;  %2964 = vset.pattern.permute.xlu0 %v3087_v30 }
 0x64e   : > { %v2114_v6 = vadd.f32 %v2113_v13, %v1994_v8 }
 0x663   : > { %v2399_v34 = vpop.f32.mrb[32].mxu1 }
 0x664   : > { %v2438_v26 = vmul.f32 %v2399_v34, %v3763_v46  ;;  %v2401_v36 = vpop.f32.mrb[33].mxu1 }
 0x665   : > { %v2439_v39 = vmul.f32 %v2401_v36, %v3765_v47  ;;  %v2403_v28 = vpop.f32.mrb[34].mxu1 }
 0x666   : > { %v4377_v48 = vadd.f32 %v2438_v26, %v2078_v41  ;;  %v2440_v53 = vmul.f32 %v2403_v28, %v3763_v46  ;;  %v2405_v42 = vpop.f32.mrb[35].mxu1 }
 0x667   : > { %v4380_v57 = vadd.f32 %v2439_v39, %v2080_v0  ;;  %v2441_v18 = vmul.f32 %v2405_v42, %v3765_v47 }
 0x668   : > { %v4383_v58 = vadd.f32 %v2440_v53, %v2082_v52 }
 0x669   : > { %v4385_v43 = vadd.f32 %v2441_v18, %v2084_v14  ;;  %v2478_v49 = vadd.f32 %v4380_v57, %v4377_v48 }
 0x66b   : > { %2479 = vadd.xlane.f32.xlu0 %v2478_v49  ;;  %v2409_v13 = vpop.f32.mrb[36].mxu1  ;;  %v2481_v44 = vadd.f32 %v4385_v43, %v4383_v58 }
 0x66c   : > { %v2442_v60 = vmul.f32 %v2409_v13, %v3763_v46  ;;  %v2411_v62 = vpop.f32.mrb[37].mxu1 }
 0x66d   : > { %v2443_v59 = vmul.f32 %v2411_v62, %v3765_v47  ;;  %2482 = vadd.xlane.f32.xlu1 %v2481_v44  ;;  %v2413_v61 = vpop.f32.mrb[38].mxu1 }
 0x66e   : > { %v4393_v37 = vadd.f32 %v2442_v60, %v2088_v2  ;;  %v2444_v41 = vmul.f32 %v2413_v61, %v3763_v46  ;;  %v2415_v16 = vpop.f32.mrb[39].mxu1 }
 0x66f   : > { %v2459_v11 = vadd.f32 %v2443_v59, %v2090_v21  ;;  %v2445_v0 = vmul.f32 %v2415_v16, %v3765_v47 }
 0x670   : > { %v4397_v52 = vadd.f32 %v2444_v41, %v2092_v54 }
 0x671   : > { %v4399_v14 = vadd.f32 %v2445_v0, %v2094_v45  ;;  %v2484_v38 = vadd.f32 %v2459_v11, %v4393_v37 }
 0x673   : > { %2485 = vadd.xlane.f32.xlu0 %v2484_v38  ;;  %v2419_v40 = vpop.f32.mrb[40].mxu1  ;;  %v2487_v2 = vadd.f32 %v4399_v14, %v4397_v52 }
 0x674   : > { %v2446_v50 = vmul.f32 %v2419_v40, %v3763_v46  ;;  %v2421_v63 = vpop.f32.mrb[41].mxu1 }
 0x675   : > { %v2447_v3 = vmul.f32 %v2421_v63, %v3765_v47  ;;  %v2423_v5 = vpop.f32.mrb[42].mxu1 }
 0x676   : > { %v4406_v19 = vadd.f32 %v2446_v50, %v2098_v1  ;;  %v2448_v12 = vmul.f32 %v2423_v5, %v3763_v46  ;;  %v2425_v21 = vpop.f32.mrb[43].mxu1 }
 0x677   : > { %v2463_v54 = vadd.f32 %v2447_v3, %v2100_v33  ;;  %v2449_v45 = vmul.f32 %v2425_v21, %v3765_v47  ;;  %2488 = vadd.xlane.f32.xlu0 %v2487_v2 }
 0x678   : > { %v4410_v20 = vadd.f32 %v2448_v12, %v2102_v7 }
 0x679   : > { %v4412_v35 = vadd.f32 %v2449_v45, %v2104_v25  ;;  %v2490_v56 = vadd.f32 %v2463_v54, %v4406_v19 }
 0x67b   : > { %2491 = vadd.xlane.f32.xlu1 %v2490_v56  ;;  %v2429_v51 = vpop.f32.mrb[44].mxu1  ;;  %v2493_v15 = vadd.f32 %v4412_v35, %v4410_v20 }
 0x67c   : > { %v2450_v29 = vmul.f32 %v2429_v51, %v3763_v46  ;;  %v2431_v1 = vpop.f32.mrb[45].mxu1 }
 0x67d   : > { %v2451_v23 = vmul.f32 %v2431_v1, %v3765_v47  ;;  %2494 = vadd.xlane.f32.xlu0 %v2493_v15  ;;  %v2433_v10 = vpop.f32.mrb[46].mxu1 }
 0x67e   : > { %v4419_v33 = vadd.f32 %v2450_v29, %v2108_v31  ;;  %v2452_v7 = vmul.f32 %v2433_v10, %v3763_v46  ;;  %v2435_v25 = vpop.f32.mrb[47].mxu1 }
 0x67f   : > { %v2467_v55 = vadd.f32 %v2451_v23, %v2110_v9  ;;  %v2453_v27 = vmul.f32 %v2435_v25, %v3765_v47  ;;  %v2470_v25 = vld [vmem:[%s4599_s2] sm:$0xff] }
 0x680   : > { %v4423_v4 = vadd.f32 %v2452_v7, %v2112_v24 }
 0x681   : > { %v4425_v32 = vadd.f32 %v2453_v27, %v2114_v6  ;;  %v2496_v22 = vadd.f32 %v2467_v55, %v4419_v33  ;;  %v2471_v27 = vld [vmem:[%s4599_s2 + $0x8] sm:$0xff] }
 0x683   : > { %2497 = vadd.xlane.f32.xlu1 %v2496_v22  ;;  %v2499_v17 = vadd.f32 %v4425_v32, %v4423_v4  ;;  %v2475_v22 = vld [vmem:[%s4599_s2 + $0x28] sm:$0xff] }
 0x685   : > { %2500 = vadd.xlane.f32.xlu0 %v2499_v17  ;;  %v3088_v17 = vmov 2  }
 0x6f8   : > { %v2480_v46 = vpop.xlane.xlu0 %2479 }
 0x6f9   : > { %v2502_v31 = vmul.f32 0.00390625, %v2480_v46 }
 0x6fa   : > { %v2483_v8 = vpop.xlane.xlu1 %2482 }
 0x6fb   : > { %v4433_v47 = vsub.f32 %v4377_v48, %v2502_v31  ;;  %v4436_v9 = vsub.f32 %v4380_v57, %v2502_v31  ;;  %v2503_v24 = vmul.f32 0.00390625, %v2483_v8 }
 0x6fd   : > { %v2526_v6 = vmul.f32 %v4433_v47, %v4433_v47  ;;  %v2527_v34 = vmul.f32 %v4436_v9, %v4436_v9  ;;  %v4443_v26 = vsub.f32 %v4383_v58, %v2503_v24  ;;  %v4446_v36 = vsub.f32 %v4385_v43, %v2503_v24 }
 0x6ff   : > { %v2528_v39 = vmul.f32 %v4443_v26, %v4443_v26  ;;  %v2529_v28 = vmul.f32 %v4446_v36, %v4446_v36  ;;  %v2542_v48 = vadd.f32 %v2527_v34, %v2526_v6 }
 0x700   : > { %v2486_v53 = vpop.xlane.xlu0 %2485 }
 0x701   : > { %v2504_v42 = vmul.f32 0.00390625, %v2486_v53  ;;  %2543 = vadd.xlane.f32.xlu1 %v2542_v48  ;;  %v2545_v57 = vadd.f32 %v2529_v28, %v2528_v39 }
 0x703   : > { %v4453_v18 = vsub.f32 %v4393_v37, %v2504_v42  ;;  %v4455_v49 = vsub.f32 %v2459_v11, %v2504_v42  ;;  %2546 = vadd.xlane.f32.xlu0 %v2545_v57 }
 0x704   : > { %v2489_v58 = vpop.xlane.xlu0 %2488 }
 0x705   : > { %v2530_v43 = vmul.f32 %v4453_v18, %v4453_v18  ;;  %v2531_v13 = vmul.f32 %v4455_v49, %v4455_v49  ;;  %v2505_v44 = vmul.f32 0.00390625, %v2489_v58 }
 0x707   : > { %v4462_v60 = vsub.f32 %v4397_v52, %v2505_v44  ;;  %v4465_v62 = vsub.f32 %v4399_v14, %v2505_v44  ;;  %v2548_v59 = vadd.f32 %v2531_v13, %v2530_v43 }
 0x708   : > { %v2492_v61 = vpop.xlane.xlu1 %2491 }
 0x709   : > { %v2532_v37 = vmul.f32 %v4462_v60, %v4462_v60  ;;  %v2533_v41 = vmul.f32 %v4465_v62, %v4465_v62  ;;  %v2506_v16 = vmul.f32 0.00390625, %v2492_v61  ;;  %2549 = vadd.xlane.f32.xlu1 %v2548_v59 }
 0x70a   : > { %v2495_v11 = vpop.xlane.xlu0 %2494 }
 0x70b   : > { %v4472_v0 = vsub.f32 %v4406_v19, %v2506_v16  ;;  %v4474_v38 = vsub.f32 %v2463_v54, %v2506_v16  ;;  %v2507_v52 = vmul.f32 0.00390625, %v2495_v11  ;;  %v2551_v40 = vadd.f32 %v2533_v41, %v2532_v37 }
 0x70d   : > { %v2534_v14 = vmul.f32 %v4472_v0, %v4472_v0  ;;  %v2535_v50 = vmul.f32 %v4474_v38, %v4474_v38  ;;  %v4481_v63 = vsub.f32 %v4410_v20, %v2507_v52  ;;  %v4484_v3 = vsub.f32 %v4412_v35, %v2507_v52  ;;  %2552 = vadd.xlane.f32.xlu0 %v2551_v40 }
 0x70f   : > { %v2536_v5 = vmul.f32 %v4481_v63, %v4481_v63  ;;  %v2537_v2 = vmul.f32 %v4484_v3, %v4484_v3  ;;  %v2554_v19 = vadd.f32 %v2535_v50, %v2534_v14  ;;  %v2476_v50 = vld [vmem:[%s4599_s2 + $0x30] sm:$0xff] }
 0x710   : > { %v2498_v12 = vpop.xlane.xlu1 %2497 }
 0x711   : > { %v2508_v21 = vmul.f32 0.00390625, %v2498_v12  ;;  %2555 = vadd.xlane.f32.xlu1 %v2554_v19  ;;  %v2557_v54 = vadd.f32 %v2537_v2, %v2536_v5 }
 0x712   : > { %v2501_v45 = vpop.xlane.xlu0 %2500 }
 0x713   : > { %v4491_v56 = vsub.f32 %v4419_v33, %v2508_v21  ;;  %v4493_v20 = vsub.f32 %v2467_v55, %v2508_v21  ;;  %v2509_v35 = vmul.f32 0.00390625, %v2501_v45  ;;  %2558 = vadd.xlane.f32.xlu0 %v2557_v54  ;;  %v2472_v55 = vld [vmem:[%s4599_s2 + $0x10] sm:$0xff] }
 0x715   : > { %v2538_v51 = vmul.f32 %v4491_v56, %v4491_v56  ;;  %v2539_v15 = vmul.f32 %v4493_v20, %v4493_v20  ;;  %v4500_v29 = vsub.f32 %v4423_v4, %v2509_v35  ;;  %v4503_v1 = vsub.f32 %v4425_v32, %v2509_v35  ;;  %v2473_v4 = vld [vmem:[%s4599_s2 + $0x18] sm:$0xff]  ;;  %v2474_v32 = vld [vmem:[%s4599_s2 + $0x20] sm:$0xff] }
 0x717   : > { %v2540_v23 = vmul.f32 %v4500_v29, %v4500_v29  ;;  %v2541_v10 = vmul.f32 %v4503_v1, %v4503_v1  ;;  %v2560_v33 = vadd.f32 %v2539_v15, %v2538_v51 }
 0x719   : > { %2561 = vadd.xlane.f32.xlu1 %v2560_v33  ;;  %v2563_v7 = vadd.f32 %v2541_v10, %v2540_v23 }
 0x71b   : > { %2564 = vadd.xlane.f32.xlu0 %v2563_v7 }
 0x72a   : > { %2656 = vperm.xlu1 %2963, %v2470_v25  }
 0x72e   : > { %2666 = vperm.xlu1 %2963, %v2472_v55  }
 0x731   : > { %2661 = vperm.xlu0 %2964, %v2471_v27  }
 0x732   : > { %2671 = vperm.xlu1 %2963, %v2473_v4  }
 0x735   : > { %2676 = vperm.xlu0 %2964, %v2474_v32  }
 0x736   : > { %2681 = vperm.xlu1 %2963, %v2475_v22  }
 0x739   : > { %2966 = vset.pattern.permute.xlu0 %v3088_v17 }
 0x73a   : > { %2965 = vset.pattern.permute.xlu1 %v3088_v17 }
 0x78e   : > { %v2544_v46 = vpop.xlane.xlu1 %2543 }
 0x78f   : > { %v2566_v31 = vmul.f32 0.00390625, %v2544_v46 }
 0x790   : > { %v2547_v8 = vpop.xlane.xlu0 %2546 }
 0x791   : > { %v2574_v24 = vadd.f32 1e-05, %v2566_v31  ;;  %v2567_v6 = vmul.f32 0.00390625, %v2547_v8 }
 0x793   : > { %3057 = vrsqrt.f32 %v2574_v24  ;;  %v2575_v34 = vadd.f32 1e-05, %v2567_v6  ;;  %v2710_v6 = vld [vmem:[%s3205_s21] sm:$0xff] }
 0x795   : > { %3059 = vrsqrt.f32 %v2575_v34  ;;  %v2711_v34 = vld [vmem:[%s3205_s21 + $0x8] sm:$0xff] }
 0x796   : > { %v2550_v39 = vpop.xlane.xlu1 %2549 }
 0x797   : > { %v2568_v28 = vmul.f32 0.00390625, %v2550_v39 }
 0x799   : > { %v2576_v48 = vadd.f32 1e-05, %v2568_v28 }
 0x79a   : > { %v2553_v53 = vpop.xlane.xlu0 %2552 }
 0x79b   : > { %3061 = vrsqrt.f32 %v2576_v48  ;;  %v2569_v42 = vmul.f32 0.00390625, %v2553_v53 }
 0x79d   : > { %v3058_v57 = vpop.eup %3057  ;;  %v2577_v58 = vadd.f32 1e-05, %v2569_v42 }
 0x79e   : > { %v2556_v43 = vpop.xlane.xlu1 %2555  ;;  %v2590_v13 = vmul.f32 %v3058_v57, %v2470_v25  ;;  %v2477_v25 = vld [vmem:[%s4599_s2 + $0x38] sm:$0xff] }
 0x79f   : > { %v3060_v44 = vpop.eup %3059  ;;  %3063 = vrsqrt.f32 %v2577_v58  ;;  %v2570_v59 = vmul.f32 0.00390625, %v2556_v43 }
 0x7a0   : > { %v2591_v61 = vmul.f32 %v3060_v44, %v2471_v27  ;;  %2600 = vperm.xlu1 %2965, %v2590_v13   ;;  %v2559_v37 = vpop.xlane.xlu0 %2558 }
 0x7a1   : > { %v2578_v41 = vadd.f32 1e-05, %v2570_v59  ;;  %v2571_v16 = vmul.f32 0.00390625, %v2559_v37  ;;  %v2715_v37 = vld [vmem:[%s3205_s21 + $0x28] sm:$0xff] }
 0x7a2   : > { %2605 = vperm.xlu0 %2966, %v2591_v61   ;;  %v2714_v61 = vld [vmem:[%s3205_s21 + $0x20] sm:$0xff] }
 0x7a3   : > { %3065 = vrsqrt.f32 %v2578_v41  ;;  %v2579_v11 = vadd.f32 1e-05, %v2571_v16 }
 0x7a5   : > { %v3062_v52 = vpop.eup %3061  ;;  %3067 = vrsqrt.f32 %v2579_v11 }
 0x7a6   : > { %v2562_v40 = vpop.xlane.xlu1 %2561  ;;  %v2592_v14 = vmul.f32 %v3062_v52, %v2472_v55  ;;  %2967 = vset.pattern.permute.xlu0 %v3087_v30 }
 0x7a7   : > { %v2572_v5 = vmul.f32 0.00390625, %v2562_v40  ;;  %2686 = vperm.xlu0 %2967, %v2476_v50  }
 0x7a8   : > { %2610 = vperm.xlu1 %2965, %v2592_v14   ;;  %v2565_v2 = vpop.xlane.xlu0 %2564 }
 0x7a9   : > { %v3064_v19 = vpop.eup %3063  ;;  %v2580_v12 = vadd.f32 1e-05, %v2572_v5  ;;  %v2573_v21 = vmul.f32 0.00390625, %v2565_v2  ;;  %v2716_v5 = vld [vmem:[%s3205_s21 + $0x30] sm:$0xff]  ;;  %v2717_v2 = vld [vmem:[%s3205_s21 + $0x38] sm:$0xff] }
 0x7aa   : > { %v2593_v54 = vmul.f32 %v3064_v19, %v2473_v4  ;;  %v2657_v27 = vpop.permute.xlu1 %2656 }
 0x7ab   : > { %3069 = vrsqrt.f32 %v2580_v12  ;;  %v2581_v45 = vadd.f32 1e-05, %v2573_v21 }
 0x7ac   : > { %2615 = vperm.xlu1 %2965, %v2593_v54  }
 0x7ad   : > { %v3066_v35 = vpop.eup %3065  ;;  %3071 = vrsqrt.f32 %v2581_v45  ;;  %v2718_v45 = vld [vmem:[%s3205_s21 + $0x40] sm:$0xff] }
 0x7ae   : > { %v2594_v51 = vmul.f32 %v3066_v35, %v2474_v32  ;;  %v2667_v4 = vpop.permute.xlu1 %2666  ;;  %v2719_v35 = vld [vmem:[%s3205_s21 + $0x48] sm:$0xff] }
 0x7af   : > { %v3068_v15 = vpop.eup %3067 }
 0x7b0   : > { %2620 = vperm.xlu1 %2965, %v2594_v51   ;;  %v2595_v23 = vmul.f32 %v3068_v15, %v2475_v22  ;;  %v2662_v22 = vpop.permute.xlu0 %2661 }
 0x7b2   : > { %v2672_v32 = vpop.permute.xlu1 %2671 }
 0x7b4   : > { %2625 = vperm.xlu1 %2965, %v2595_v23   ;;  %v2677_v46 = vpop.permute.xlu0 %2676 }
 0x7b5   : > { %v3070_v10 = vpop.eup %3069 }
 0x7b6   : > { %v2596_v33 = vmul.f32 %v3070_v10, %v2476_v50  ;;  %v4535_v17 = vpop.permute.xlu1 %2681 }
 0x7b7   : > { %v3072_v7 = vpop.eup %3071 }
 0x7b8   : > { %2630 = vperm.xlu1 %2965, %v2596_v33   ;;  %v2597_v55 = vmul.f32 %v3072_v7, %v2477_v25 }
 0x7bc   : > { %2635 = vperm.xlu1 %2965, %v2597_v55  }
 0x7c0   : > { %2968 = vset.pattern.permute.xlu1 %v3087_v30 }
 0x7c1   : > { %2691 = vperm.xlu1 %2968, %v2477_v25   ;;  %v2721_v25 = vld [vmem:[%s3205_s21 + $0x58] sm:$0xff] }
 0x81f   : > { %v2601_v31 = vpop.permute.xlu1 %2600 }
 0x820   : > { %v2638_v8 = vmul.f32 %v2601_v31, %v4433_v47  ;;  %v2639_v24 = vmul.f32 %v2601_v31, %v4436_v9  ;;  %v2712_v47 = vld [vmem:[%s3205_s21 + $0x10] sm:$0xff]  ;;  %v2713_v9 = vld [vmem:[%s3205_s21 + $0x18] sm:$0xff]  ;;  %v2723_v31 = vld [vmem:[%s3205_s21 + $0x68] sm:$0xff] }
 0x821   : > { %v2606_v39 = vpop.permute.xlu0 %2605 }
 0x822   : > { %v2694_v30 = vadd.f32 %v2657_v27, %v2638_v8  ;;  %v2695_v28 = vadd.f32 %v2657_v27, %v2639_v24  ;;  %v2640_v48 = vmul.f32 %v2606_v39, %v4443_v26  ;;  %v2641_v53 = vmul.f32 %v2606_v39, %v4446_v36 }
 0x824   : > { %v2726_v42 = vadd.f32 %v2710_v6, %v2694_v30  ;;  %v2727_v57 = vadd.f32 %v2711_v34, %v2695_v28  ;;  %v2696_v58 = vadd.f32 %v2662_v22, %v2640_v48  ;;  %v2697_v26 = vadd.f32 %v2662_v22, %v2641_v53  ;;  %v2724_v30 = vld [vmem:[%s3205_s21 + $0x70] sm:$0xff]  ;;  %v2725_v28 = vld [vmem:[%s3205_s21 + $0x78] sm:$0xff] }
 0x826   : > { %2742 = vst [vmem:[%s4548_s22] sm:$0xff] %v2726_v42  ;;  %2743 = vst [vmem:[%s4548_s22 + $0x8] sm:$0xff] %v2727_v57  ;;  %v2728_v36 = vadd.f32 %v2712_v47, %v2696_v58  ;;  %v2729_v43 = vadd.f32 %v2713_v9, %v2697_v26 }
 0x827   : > { %v2611_v13 = vpop.permute.xlu1 %2610 }
 0x828   : > { %2744 = vst [vmem:[%s4548_s22 + $0x10] sm:$0xff] %v2728_v36  ;;  %2745 = vst [vmem:[%s4548_s22 + $0x18] sm:$0xff] %v2729_v43  ;;  %v2642_v44 = vmul.f32 %v2611_v13, %v4453_v18  ;;  %v2643_v59 = vmul.f32 %v2611_v13, %v4455_v49 }
 0x82a   : > { %v2698_v41 = vadd.f32 %v2667_v4, %v2642_v44  ;;  %v2699_v16 = vadd.f32 %v2667_v4, %v2643_v59  ;;  %v2687_v4 = vpop.permute.xlu0 %2686 }
 0x82b   : > { %v2616_v11 = vpop.permute.xlu1 %2615 }
 0x82c   : > { %v2730_v52 = vadd.f32 %v2714_v61, %v2698_v41  ;;  %v2731_v40 = vadd.f32 %v2715_v37, %v2699_v16  ;;  %v2644_v14 = vmul.f32 %v2616_v11, %v4462_v60  ;;  %v2645_v50 = vmul.f32 %v2616_v11, %v4465_v62 }
 0x82e   : > { %2746 = vst [vmem:[%s4548_s22 + $0x20] sm:$0xff] %v2730_v52  ;;  %2747 = vst [vmem:[%s4548_s22 + $0x28] sm:$0xff] %v2731_v40  ;;  %v2700_v18 = vadd.f32 %v2672_v32, %v2644_v14  ;;  %v2701_v49 = vadd.f32 %v2672_v32, %v2645_v50 }
 0x82f   : > { %v2621_v19 = vpop.permute.xlu1 %2620 }
 0x830   : > { %v2732_v12 = vadd.f32 %v2716_v5, %v2700_v18  ;;  %v2733_v21 = vadd.f32 %v2717_v2, %v2701_v49  ;;  %v2646_v54 = vmul.f32 %v2621_v19, %v4472_v0  ;;  %v2647_v60 = vmul.f32 %v2621_v19, %v4474_v38  ;;  %v2720_v0 = vld [vmem:[%s3205_s21 + $0x50] sm:$0xff] }
 0x832   : > { %2748 = vst [vmem:[%s4548_s22 + $0x30] sm:$0xff] %v2732_v12  ;;  %2749 = vst [vmem:[%s4548_s22 + $0x38] sm:$0xff] %v2733_v21  ;;  %v2702_v62 = vadd.f32 %v2677_v46, %v2646_v54  ;;  %v2703_v51 = vadd.f32 %v2677_v46, %v2647_v60  ;;  %v2722_v46 = vld [vmem:[%s3205_s21 + $0x60] sm:$0xff] }
 0x833   : > { %v2626_v15 = vpop.permute.xlu1 %2625 }
 0x834   : > { %v2734_v23 = vadd.f32 %v2718_v45, %v2702_v62  ;;  %v2735_v10 = vadd.f32 %v2719_v35, %v2703_v51  ;;  %v2648_v33 = vmul.f32 %v2626_v15, %v4481_v63  ;;  %v2649_v7 = vmul.f32 %v2626_v15, %v4484_v3 }
 0x836   : > { %2750 = vst [vmem:[%s4548_s22 + $0x40] sm:$0xff] %v2734_v23  ;;  %2751 = vst [vmem:[%s4548_s22 + $0x48] sm:$0xff] %v2735_v10  ;;  %v2704_v38 = vadd.f32 %v4535_v17, %v2648_v33  ;;  %v2705_v55 = vadd.f32 %v4535_v17, %v2649_v7 }
 0x837   : > { %v2631_v27 = vpop.permute.xlu1 %2630 }
 0x838   : > { %v2736_v32 = vadd.f32 %v2720_v0, %v2704_v38  ;;  %v2737_v22 = vadd.f32 %v2721_v25, %v2705_v55  ;;  %v2650_v63 = vmul.f32 %v2631_v27, %v4491_v56  ;;  %v2651_v3 = vmul.f32 %v2631_v27, %v4493_v20 }
 0x83a   : > { %2752 = vst [vmem:[%s4548_s22 + $0x50] sm:$0xff] %v2736_v32  ;;  %2753 = vst [vmem:[%s4548_s22 + $0x58] sm:$0xff] %v2737_v22  ;;  %v2706_v8 = vadd.f32 %v2687_v4, %v2650_v63  ;;  %v2707_v24 = vadd.f32 %v2687_v4, %v2651_v3 }
 0x83b   : > { %v2636_v17 = vpop.permute.xlu1 %2635 }
 0x83c   : > { %v2738_v6 = vadd.f32 %v2722_v46, %v2706_v8  ;;  %v2739_v34 = vadd.f32 %v2723_v31, %v2707_v24  ;;  %v2652_v39 = vmul.f32 %v2636_v17, %v4500_v29  ;;  %v2653_v56 = vmul.f32 %v2636_v17, %v4503_v1 }
 0x83e   : > { %2754 = vst [vmem:[%s4548_s22 + $0x60] sm:$0xff] %v2738_v6  ;;  %2755 = vst [vmem:[%s4548_s22 + $0x68] sm:$0xff] %v2739_v34 }
 0x840   : > { %v2692_v20 = vpop.permute.xlu1 %2691 }
 0x841   : > { %v2708_v48 = vadd.f32 %v2692_v20, %v2652_v39  ;;  %v2709_v53 = vadd.f32 %v2692_v20, %v2653_v56 }
 0x843   : > { %v2740_v47 = vadd.f32 %v2724_v30, %v2708_v48  ;;  %v2741_v9 = vadd.f32 %v2725_v28, %v2709_v53 }
 0x845   : > { %2756 = vst [vmem:[%s4548_s22 + $0x70] sm:$0xff] %v2740_v47  ;;  %2757 = vst [vmem:[%s4548_s22 + $0x78] sm:$0xff] %v2741_v9 }
 0x846 PF: > { %s14_s15 = sadd.s32 1, %s3079_s15  }
 0x847   : > { %p11_p4 = scmp.ge.s32.totalorder %s14_s15, 6  }
 0x849   :  { %13 = sbr.rel (!%p11_p4) target bundleno = 1 (0x1), region = 72 }

</bundles_post_ra>
